<compile_context>
chip_gen: v5e
topology: v5e:2x2
jax: 0.10.0
libtpu: 0.0.40
codegen_flags: <defaults>
</compile_context>

<pallas_src>
import functools
import math

import jax
import jax.numpy as jnp
from jax.experimental import pallas as pl
from jax.experimental.pallas import tpu as pltpu


# Conservative resident-VMEM budget that works across v5e/v6e (128 MiB) and v7x (64 MiB).
_VMEM_RESIDENT_BUDGET = 48 << 20


def _fused_mlp_kernel(*refs, activations):
    """Fused MLP over one batch tile.

    refs = (x_ref, w1_ref, b1_ref, ..., wn_ref, bn_ref, out_ref).
    All hidden activations live in VMEM/vregs; only the final result is stored.
    """
    n_layers = len(activations)
    x_ref = refs[0]
    out_ref = refs[-1]

    h = x_ref[...]  # (TM, Din) f32; cast (VPU) to the matmul dtype lazily per layer.
    for i in range(n_layers):
        w_ref = refs[1 + 2 * i]
        b_ref = refs[2 + 2 * i]
        lhs = h if h.dtype == w_ref.dtype else h.astype(w_ref.dtype)
        # MXU matmul with f32 accumulation.
        y = jnp.dot(lhs, w_ref[...], preferred_element_type=jnp.float32)
        # Bias is (1, Dout) f32 -> broadcasts over rows without an explicit reshape.
        y = y + b_ref[...]
        act = activations[i]
        if act == "relu":
            y = jnp.maximum(y, 0.0)
        elif act == "tanh":
            y = jnp.tanh(y)
        elif act is not None:
            raise ValueError(f"unknown activation {act}")
        h = y  # keep f32 between layers; next iteration casts to the weight dtype if needed
    out_ref[...] = h.astype(out_ref.dtype)


def prepare_params(params, *, compute_dtype=jnp.float32, lane=128):
    """Pad hidden (non-final) output dims to a multiple of `lane` with zeros and cast
    weights to the matmul dtype ONCE, outside the per-call hot path.

    Zero columns on W_i / zeros on b_i together with matching zero rows on W_{i+1} leave
    the result numerically identical (padded activations are ReLU(0) = 0).
    Returns a list of (W (Din_i, Dout_i_padded), b (1, Dout_i_padded) f32).
    """
    n = len(params)
    prepared = []
    carry_pad = 0  # zero rows appended so this layer's input width matches the previous padded output
    for i, (w, b) in enumerate(params):
        din, dout = w.shape
        pad_out = 0 if i == n - 1 else (-dout) % lane
        if carry_pad or pad_out:
            w = jnp.pad(w, ((0, carry_pad), (0, pad_out)))
        if pad_out:
            b = jnp.pad(b, (0, pad_out))
        prepared.append((jnp.asarray(w, compute_dtype),
                         jnp.asarray(b, jnp.float32).reshape(1, -1)))
        carry_pad = pad_out
    return prepared


def fused_mlp(x_flat, prepared, *, block_m=256, out_dtype=jnp.float32):
    """x_flat: (B, Din) f32, prepared: output of prepare_params. Returns (B, Dout_last)."""
    B, Din = x_flat.shape
    n_layers = len(prepared)
    assert prepared[0][0].shape[0] == Din, "prepared params do not match flattened input dim"
    Dout = prepared[-1][0].shape[1]
    activations = tuple("tanh" if i == n_layers - 1 else "relu" for i in range(n_layers))

    x_isz = x_flat.dtype.itemsize
    out_isz = jnp.dtype(out_dtype).itemsize
    sub = 8 if (x_isz == 4 and out_isz == 4) else 16  # sublane granularity of the tiled arrays

    # --- Batch tiling ---
    # Tiny batch: single full-array tile (valid via the "block == full dim" exemption).
    # Otherwise: >= 2 tiles (v7x megacore), tile rows rounded up only to the sublane
    # granularity, so padding waste is bounded (not a full block_m multiple).
    if B <= 32:
        tm, n_tiles = B, 1
    else:
        n_tiles = max(2, pl.cdiv(B, block_m))
        tm = pl.cdiv(B, n_tiles)
        tm = ((tm + sub - 1) // sub) * sub
    Bp = tm * n_tiles
    pad = Bp - B
    if pad:
        x_flat = jnp.pad(x_flat, ((0, pad), (0, 0)))
    grid = (n_tiles,)

    # --- VMEM accounting (resident weights + double-buffered I/O tiles + f32 temporaries) ---
    w_bytes = sum(w.size * w.dtype.itemsize for w, _ in prepared)
    b_bytes = sum(b.size * b.dtype.itemsize for _, b in prepared)
    max_width = max([Din] + [w.shape[1] for w, _ in prepared])
    act_tmp = 4 * tm * max_width * 4                      # generous bound on f32 temporaries
    io_tiles = 2 * tm * Din * x_isz + 2 * tm * Dout * out_isz

    flops = 2 * Bp * sum(w.shape[0] * w.shape[1] for w, _ in prepared)
    bytes_accessed = Bp * Din * x_isz + w_bytes + b_bytes + Bp * Dout * out_isz

    def run(single_buffer_weights):
        wbuf = 1 if single_buffer_weights else 2
        needed = wbuf * (w_bytes + b_bytes) + io_tiles + act_tmp
        if needed > _VMEM_RESIDENT_BUDGET:
            # TODO(synk): add a K/N-tiled fallback (grid axis over Din/Dout with an f32 VMEM
            # accumulator, "arbitrary" semantics) for layers too wide to keep VMEM-resident.
            raise NotImplementedError(
                f"resident weights ({needed} B) exceed the VMEM budget; K/N tiling not implemented")
        vmem_limit = int(min(64 << 20, needed + (8 << 20)))

        # Weights/biases have a constant index_map -> DMA'd once, VMEM-resident across batch
        # tiles. Single-buffer them (double-buffering a constant block only doubles footprint).
        pipeline_mode = pl.Buffered(1) if single_buffer_weights else None

        args = [x_flat]
        in_specs = [pl.BlockSpec((tm, Din), lambda i: (i, 0))]
        for w, b in prepared:
            din_i, dout_i = w.shape
            args.append(w)
            args.append(b)
            if pipeline_mode is None:
                in_specs.append(pl.BlockSpec((din_i, dout_i), lambda i: (0, 0)))
                in_specs.append(pl.BlockSpec((1, dout_i), lambda i: (0, 0)))
            else:
                in_specs.append(pl.BlockSpec((din_i, dout_i), lambda i: (0, 0),
                                             pipeline_mode=pipeline_mode))
                in_specs.append(pl.BlockSpec((1, dout_i), lambda i: (0, 0),
                                             pipeline_mode=pipeline_mode))
        out_spec = pl.BlockSpec((tm, Dout), lambda i: (i, 0))

        return pl.pallas_call(
            functools.partial(_fused_mlp_kernel, activations=activations),
            out_shape=jax.ShapeDtypeStruct((Bp, Dout), out_dtype),
            grid=grid,
            in_specs=in_specs,
            out_specs=out_spec,
            compiler_params=pltpu.CompilerParams(
                dimension_semantics=("parallel",),
                vmem_limit_bytes=vmem_limit,
            ),
            cost_estimate=pl.CostEstimate(
                flops=flops,
                transcendentals=Bp * Dout,  # final tanh
                bytes_accessed=bytes_accessed,
            ),
        )(*args)

    try:
        out = run(single_buffer_weights=True)
    except NotImplementedError:
        raise
    except Exception:
        # pl.Buffered(1) not supported by this jax/libtpu build -> default double-buffering.
        out = run(single_buffer_weights=False)

    if pad:
        out = out[:B]
    return out


def init_simple_mlp_params(key, dims_list):
    """Deterministic init matching nn.Linear default: U(-1/sqrt(fan_in), 1/sqrt(fan_in))."""
    params = []
    for i in range(len(dims_list) - 1):
        din, dout = dims_list[i], dims_list[i + 1]
        key, kw, kb = jax.random.split(key, 3)
        bound = 1.0 / math.sqrt(din)
        w = jax.random.uniform(kw, (din, dout), jnp.float32, -bound, bound)
        b = jax.random.uniform(kb, (dout,), jnp.float32, -bound, bound)
        params.append((w, b))
    return params


def simple_mlp_reshape_forward(x, prepared_params, reshape_back=True, *, block_m=256,
                               out_dtype=jnp.float32):
    """Pallas implementation of SimpleMLPreshape.forward.

    Default activations (matching the module): ReLU on hidden layers, Tanh on the last layer.
    `prepared_params` comes from prepare_params (pre-padded / pre-cast, done once).
    """
    orig_shape = x.shape
    B = x.shape[0]
    h = x.reshape(B, -1)
    out = fused_mlp(h, prepared_params, block_m=block_m, out_dtype=out_dtype)
    if reshape_back:
        return out.reshape(orig_shape)
    return out


def reference_forward(x, params, reshape_back=True):
    orig_shape = x.shape
    h = x.reshape(x.shape[0], -1)
    n_layers = len(params)
    for i, (w, b) in enumerate(params):
        h = h @ w + b
        h = jnp.tanh(h) if i == n_layers - 1 else jnp.maximum(h, 0.0)
    return h.reshape(orig_shape) if reshape_back else h


if __name__ == "__main__":
    key = jax.random.PRNGKey(0)
    k_x, k_p, k_x2 = jax.random.split(key, 3)

    # Small NCHW input: batch=2, channels=4, spatial=16x16 -> flattened dim 1024.
    B, C, H, W = 2, 4, 16, 16
    x = jax.random.normal(k_x, (B, C, H, W), jnp.float32)

    flat = C * H * W
    hidden = 32
    dims_list = [flat, hidden, flat]  # Linear(1024,32)+ReLU, Linear(32,1024)+Tanh
    params = init_simple_mlp_params(k_p, dims_list)

    ref = reference_forward(x, params, reshape_back=True)

    # Full f32 path (tight tolerance). Hidden dim is zero-padded 32 -> 128 inside
    # prepare_params (numerically identical).
    prepared_f32 = prepare_params(params, compute_dtype=jnp.float32)
    out = simple_mlp_reshape_forward(x, prepared_f32, reshape_back=True)
    out = jax.block_until_ready(out)
    assert out.shape == x.shape, (out.shape, x.shape)
    assert jnp.allclose(out, ref, atol=1e-5, rtol=1e-5), "f32 fused kernel mismatch vs reference"

    # bf16 matmul inputs (weights pre-cast once, x cast in-kernel) + f32 accumulation/activation.
    prepared_bf16 = prepare_params(params, compute_dtype=jnp.bfloat16)
    out_bf16 = simple_mlp_reshape_forward(x, prepared_bf16, reshape_back=True)
    out_bf16 = jax.block_until_ready(out_bf16)
    assert jnp.allclose(out_bf16, ref, atol=5e-2, rtol=5e-2), "bf16 fused kernel mismatch vs reference"

    # Larger batch exercising the multi-tile (>= 2 tiles / megacore) + sublane-pad path.
    B2 = 50
    x2 = jax.random.normal(k_x2, (B2, C, H, W), jnp.float32)
    ref2 = reference_forward(x2, params, reshape_back=True)
    out2 = jax.block_until_ready(simple_mlp_reshape_forward(x2, prepared_f32, reshape_back=True))
    assert out2.shape == x2.shape, (out2.shape, x2.shape)
    assert jnp.allclose(out2, ref2, atol=1e-5, rtol=1e-5), "multi-tile fused kernel mismatch vs reference"

    print("KERNEL_OK")
</pallas_src>

<mosaic_0001>
module attributes {stable_mosaic.version = 11 : i64} {
  func.func @_fused_mlp_kernel(%arg0: i32, %arg1: memref<2x1024xf32, #tpu.memory_space<vmem>>, %arg2: memref<1024x128xf32, #tpu.memory_space<vmem>>, %arg3: memref<1x128xf32, #tpu.memory_space<vmem>>, %arg4: memref<128x1024xf32, #tpu.memory_space<vmem>>, %arg5: memref<1x1024xf32, #tpu.memory_space<vmem>>, %arg6: memref<2x1024xf32, #tpu.memory_space<vmem>>) attributes {dimension_semantics = [#tpu.dimension_semantics<parallel>], iteration_bounds = array<i64: 1>, scalar_prefetch = 0 : i64, scratch_operands = 0 : i64, tpu.core_type = #tpu.core_type<tc>, window_params = [{transform_indices = @transform_0, window_bounds = array<i64: 2, 1024>}, {pipeline_mode = #tpu.pipeline_mode<synchronous>, transform_indices = @transform_1, window_bounds = array<i64: 1024, 128>}, {pipeline_mode = #tpu.pipeline_mode<synchronous>, transform_indices = @transform_2, window_bounds = array<i64: 1, 128>}, {pipeline_mode = #tpu.pipeline_mode<synchronous>, transform_indices = @transform_3, window_bounds = array<i64: 128, 1024>}, {pipeline_mode = #tpu.pipeline_mode<synchronous>, transform_indices = @transform_4, window_bounds = array<i64: 1, 1024>}, {transform_indices = @transform_5, window_bounds = array<i64: 2, 1024>}]} {
    %c0 = arith.constant 0 : index
    %c0_0 = arith.constant 0 : index
    %0 = vector.load %arg1[%c0, %c0_0] : memref<2x1024xf32, #tpu.memory_space<vmem>>, vector<2x1024xf32>
    %c0_1 = arith.constant 0 : index
    %c0_2 = arith.constant 0 : index
    %1 = vector.load %arg2[%c0_1, %c0_2] : memref<1024x128xf32, #tpu.memory_space<vmem>>, vector<1024x128xf32>
    %cst = arith.constant dense<0.000000e+00> : vector<2x128xf32>
    %2 = tpu.matmul %0, %1, %cst {dimension_numbers = #tpu.dot_dimension_numbers<[1], [0], [0], [1], [0, 0, 1, 1], [], []>} : vector<2x1024xf32>, vector<1024x128xf32>, vector<2x128xf32> -> vector<2x128xf32>
    %c0_3 = arith.constant 0 : index
    %c0_4 = arith.constant 0 : index
    %3 = vector.load %arg3[%c0_3, %c0_4] : memref<1x128xf32, #tpu.memory_space<vmem>>, vector<1x128xf32>
    %4 = vector.broadcast %3 : vector<1x128xf32> to vector<2x128xf32>
    %5 = arith.addf %2, %4 : vector<2x128xf32>
    %cst_5 = arith.constant 0.000000e+00 : f32
    %6 = vector.broadcast %cst_5 : f32 to vector<2x128xf32>
    %7 = arith.maximumf %5, %6 : vector<2x128xf32>
    %c0_6 = arith.constant 0 : index
    %c0_7 = arith.constant 0 : index
    %8 = vector.load %arg4[%c0_6, %c0_7] : memref<128x1024xf32, #tpu.memory_space<vmem>>, vector<128x1024xf32>
    %cst_8 = arith.constant dense<0.000000e+00> : vector<2x1024xf32>
    %9 = tpu.matmul %7, %8, %cst_8 {dimension_numbers = #tpu.dot_dimension_numbers<[1], [0], [0], [1], [0, 0, 1, 1], [], []>} : vector<2x128xf32>, vector<128x1024xf32>, vector<2x1024xf32> -> vector<2x1024xf32>
    %c0_9 = arith.constant 0 : index
    %c0_10 = arith.constant 0 : index
    %10 = vector.load %arg5[%c0_9, %c0_10] : memref<1x1024xf32, #tpu.memory_space<vmem>>, vector<1x1024xf32>
    %11 = vector.broadcast %10 : vector<1x1024xf32> to vector<2x1024xf32>
    %12 = arith.addf %9, %11 : vector<2x1024xf32>
    %13 = math.tanh %12 : vector<2x1024xf32>
    %c0_11 = arith.constant 0 : index
    %c0_12 = arith.constant 0 : index
    %14 = vector.load %arg6[%c0_11, %c0_12] : memref<2x1024xf32, #tpu.memory_space<vmem>>, vector<2x1024xf32>
    tpu.vector_store %arg6[%c0_11, %c0_12], %13 {strides = array<i32>} : memref<2x1024xf32, #tpu.memory_space<vmem>>, vector<2x1024xf32>,
    return
  }
  func.func @transform_0(%arg0: i32) -> (i32, i32) {
    %c0_i32 = arith.constant 0 : i32
    %c0_i32_0 = arith.constant 0 : i32
    return %arg0, %c0_i32 : i32, i32
  }
  func.func @transform_1(%arg0: i32) -> (i32, i32) {
    %c0_i32 = arith.constant 0 : i32
    %c0_i32_0 = arith.constant 0 : i32
    %c0_i32_1 = arith.constant 0 : i32
    return %c0_i32, %c0_i32_0 : i32, i32
  }
  func.func @transform_2(%arg0: i32) -> (i32, i32) {
    %c0_i32 = arith.constant 0 : i32
    %c0_i32_0 = arith.constant 0 : i32
    %c0_i32_1 = arith.constant 0 : i32
    return %c0_i32, %c0_i32_0 : i32, i32
  }
  func.func @transform_3(%arg0: i32) -> (i32, i32) {
    %c0_i32 = arith.constant 0 : i32
    %c0_i32_0 = arith.constant 0 : i32
    %c0_i32_1 = arith.constant 0 : i32
    return %c0_i32, %c0_i32_0 : i32, i32
  }
  func.func @transform_4(%arg0: i32) -> (i32, i32) {
    %c0_i32 = arith.constant 0 : i32
    %c0_i32_0 = arith.constant 0 : i32
    %c0_i32_1 = arith.constant 0 : i32
    return %c0_i32, %c0_i32_0 : i32, i32
  }
  func.func @transform_5(%arg0: i32) -> (i32, i32) {
    %c0_i32 = arith.constant 0 : i32
    %c0_i32_0 = arith.constant 0 : i32
    return %arg0, %c0_i32 : i32, i32
  }
}

module attributes {stable_mosaic.version = 11 : i64} {
  func.func @_fused_mlp_kernel(%arg0: i32, %arg1: memref<2x1024xf32, #tpu.memory_space<vmem>>, %arg2: memref<1024x128xf32, #tpu.memory_space<vmem>>, %arg3: memref<1x128xf32, #tpu.memory_space<vmem>>, %arg4: memref<128x1024xf32, #tpu.memory_space<vmem>>, %arg5: memref<1x1024xf32, #tpu.memory_space<vmem>>, %arg6: memref<2x1024xf32, #tpu.memory_space<vmem>>) attributes {dimension_semantics = [#tpu.dimension_semantics<parallel>], iteration_bounds = array<i64: 1>, scalar_prefetch = 0 : i64, scratch_operands = 0 : i64, tpu.core_type = #tpu.core_type<tc>, window_params = [{transform_indices = @transform_0, window_bounds = array<i64: 2, 1024>}, {pipeline_mode = #tpu.pipeline_mode<synchronous>, transform_indices = @transform_1, window_bounds = array<i64: 1024, 128>}, {pipeline_mode = #tpu.pipeline_mode<synchronous>, transform_indices = @transform_2, window_bounds = array<i64: 1, 128>}, {pipeline_mode = #tpu.pipeline_mode<synchronous>, transform_indices = @transform_3, window_bounds = array<i64: 128, 1024>}, {pipeline_mode = #tpu.pipeline_mode<synchronous>, transform_indices = @transform_4, window_bounds = array<i64: 1, 1024>}, {transform_indices = @transform_5, window_bounds = array<i64: 2, 1024>}]} {
    %c0 = arith.constant 0 : index
    %c0_0 = arith.constant 0 : index
    %0 = vector.load %arg1[%c0, %c0_0] : memref<2x1024xf32, #tpu.memory_space<vmem>>, vector<2x1024xf32>
    %c0_1 = arith.constant 0 : index
    %c0_2 = arith.constant 0 : index
    %1 = vector.load %arg2[%c0_1, %c0_2] : memref<1024x128xf32, #tpu.memory_space<vmem>>, vector<1024x128xf32>
    %cst = arith.constant dense<0.000000e+00> : vector<2x128xf32>
    %2 = tpu.matmul %0, %1, %cst {dimension_numbers = #tpu.dot_dimension_numbers<[1], [0], [0], [1], [0, 0, 1, 1], [], []>} : vector<2x1024xf32>, vector<1024x128xf32>, vector<2x128xf32> -> vector<2x128xf32>
    %c0_3 = arith.constant 0 : index
    %c0_4 = arith.constant 0 : index
    %3 = vector.load %arg3[%c0_3, %c0_4] : memref<1x128xf32, #tpu.memory_space<vmem>>, vector<1x128xf32>
    %4 = vector.broadcast %3 : vector<1x128xf32> to vector<2x128xf32>
    %5 = arith.addf %2, %4 : vector<2x128xf32>
    %cst_5 = arith.constant 0.000000e+00 : f32
    %6 = vector.broadcast %cst_5 : f32 to vector<2x128xf32>
    %7 = arith.maximumf %5, %6 : vector<2x128xf32>
    %c0_6 = arith.constant 0 : index
    %c0_7 = arith.constant 0 : index
    %8 = vector.load %arg4[%c0_6, %c0_7] : memref<128x1024xf32, #tpu.memory_space<vmem>>, vector<128x1024xf32>
    %cst_8 = arith.constant dense<0.000000e+00> : vector<2x1024xf32>
    %9 = tpu.matmul %7, %8, %cst_8 {dimension_numbers = #tpu.dot_dimension_numbers<[1], [0], [0], [1], [0, 0, 1, 1], [], []>} : vector<2x128xf32>, vector<128x1024xf32>, vector<2x1024xf32> -> vector<2x1024xf32>
    %c0_9 = arith.constant 0 : index
    %c0_10 = arith.constant 0 : index
    %10 = vector.load %arg5[%c0_9, %c0_10] : memref<1x1024xf32, #tpu.memory_space<vmem>>, vector<1x1024xf32>
    %11 = vector.broadcast %10 : vector<1x1024xf32> to vector<2x1024xf32>
    %12 = arith.addf %9, %11 : vector<2x1024xf32>
    %13 = math.tanh %12 : vector<2x1024xf32>
    %c0_11 = arith.constant 0 : index
    %c0_12 = arith.constant 0 : index
    %14 = vector.load %arg6[%c0_11, %c0_12] : memref<2x1024xf32, #tpu.memory_space<vmem>>, vector<2x1024xf32>
    tpu.vector_store %arg6[%c0_11, %c0_12], %13 {strides = array<i32>} : memref<2x1024xf32, #tpu.memory_space<vmem>>, vector<2x1024xf32>,
    return
  }
  func.func @transform_0(%arg0: i32) -> (i32, i32) {
    %c0_i32 = arith.constant 0 : i32
    %c0_i32_0 = arith.constant 0 : i32
    return %arg0, %c0_i32 : i32, i32
  }
  func.func @transform_1(%arg0: i32) -> (i32, i32) {
    %c0_i32 = arith.constant 0 : i32
    %c0_i32_0 = arith.constant 0 : i32
    %c0_i32_1 = arith.constant 0 : i32
    return %c0_i32, %c0_i32_0 : i32, i32
  }
  func.func @transform_2(%arg0: i32) -> (i32, i32) {
    %c0_i32 = arith.constant 0 : i32
    %c0_i32_0 = arith.constant 0 : i32
    %c0_i32_1 = arith.constant 0 : i32
    return %c0_i32, %c0_i32_0 : i32, i32
  }
  func.func @transform_3(%arg0: i32) -> (i32, i32) {
    %c0_i32 = arith.constant 0 : i32
    %c0_i32_0 = arith.constant 0 : i32
    %c0_i32_1 = arith.constant 0 : i32
    return %c0_i32, %c0_i32_0 : i32, i32
  }
  func.func @transform_4(%arg0: i32) -> (i32, i32) {
    %c0_i32 = arith.constant 0 : i32
    %c0_i32_0 = arith.constant 0 : i32
    %c0_i32_1 = arith.constant 0 : i32
    return %c0_i32, %c0_i32_0 : i32, i32
  }
  func.func @transform_5(%arg0: i32) -> (i32, i32) {
    %c0_i32 = arith.constant 0 : i32
    %c0_i32_0 = arith.constant 0 : i32
    return %arg0, %c0_i32 : i32, i32
  }
}

</mosaic_0001>

<bundles_post_ra>
// kernel: tpu_custom_call.1
= control target key start
LH: loop header
LB: loop body
LE: loop exit
PB: predicated region body
PF: predicated region fallthrough
CT: control target
= control target key end

     0   :  { %10 = vsyncpa [#allocation3], 0  ;;  %s973_s0 = inlined_call_operand.hbm [shape: f32[2,1024], index: 0, kind: input, shape index: {}]   ;;  %s974_s1 = inlined_call_operand.hbm [shape: f32[1024,128], index: 1, kind: input, shape index: {}]   ;;  %s975_s2 = inlined_call_operand.vmem [shape: f32[1,128], index: 2, kind: input, shape index: {}]   ;;  %s976_s3 = inlined_call_operand.hbm [shape: f32[128,1024], index: 3, kind: input, shape index: {}]   ;;  %s977_s4 = inlined_call_operand.hbm [shape: f32[1,1024], index: 4, kind: input, shape index: {}]   ;;  %s978_s5 = inlined_call_operand.hbm [shape: f32[2,1024], index: 5, kind: output, shape index: {}]  }
   0x1   :  { %11 = vsyncpa [#allocation6], 0 }
   0x2   :  { %12 = vsyncpa [#allocation9], 0  ;;  %s29_s20 = sshll.u32 %s974_s1, 4  ;;  %s30_s20 = int_to_ptr.hbm [resolvable:$true] %s29_s20 }
   0x3   :  { %13 = vsyncpa [#allocation4], 0  ;;  %s910_s21 = smov [#allocation5]   ;;  %s19_s25 = sshll.u32 %s973_s0, 4  ;;  %s20_s25 = int_to_ptr.hbm [resolvable:$true] %s19_s25 }
   0x4   :  { %s31_s22 = sshll.u32 %s910_s21, 4  ;;  %s911_s26 = smov 128   ;;  %s32_s22 = int_to_ptr.vmem [resolvable:$true] %s31_s22 }
   0x5   :  { %s912_s27 = smov 8   ;;  %s913_s28 = smov [#allocation2]  }
   0x6   :  { %37 = dma.hbm_to_vmem [thread:$0]  %s30_s20, 16384, %s32_s22, [#allocation6], %s911_s26, %s911_s26, %s912_s27  }
   0x7   :  { %s21_s29 = sshll.u32 %s913_s28, 4  ;;  %s44_s7 = sshll.u32 %s976_s3, 4  ;;  %s22_s29 = int_to_ptr.vmem [resolvable:$true] %s21_s29  ;;  %s45_s7 = int_to_ptr.hbm [resolvable:$true] %s44_s7 }
   0x8   :  { %24 = dma.hbm_to_vmem [thread:$0]  %s20_s25, 256, %s22_s29, [#allocation3]  }
   0x9   :  { %s914_s1 = smov [#allocation7]   ;;  %s58_s0 = sshll.u32 %s977_s4, 4  ;;  %s59_s0 = int_to_ptr.hbm [resolvable:$true] %s58_s0 }
   0xa   :  { %s46_s8 = sshll.u32 %s914_s1, 4  ;;  %s915_s11 = smov 1024   ;;  %s47_s8 = int_to_ptr.vmem [resolvable:$true] %s46_s8 }
   0xb   :  { %s916_s12 = smov 64   ;;  %s917_s13 = smov [#allocation8]  }
   0xc   :  { %52 = dma.hbm_to_vmem [thread:$0]  %s45_s7, 16384, %s47_s8, [#allocation6], %s915_s11, %s915_s11, %s916_s12  }
   0xd   :  { %s60_s14 = sshll.u32 %s917_s13, 4  ;;  %s61_s14 = int_to_ptr.vmem [resolvable:$true] %s60_s14 }
   0xe   :  { %63 = dma.hbm_to_vmem [thread:$0]  %s59_s0, 128, %s61_s14, [#allocation9]  }
   0xf   :  { %902 = dma.done.wait [#allocation3], 256  }
  0x10   :  { %903 = vsyncadd [#allocation3], 4294967040 }
  0x11   :  { %904 = dma.done.wait [#allocation6], 32768  }
  0x12   :  { %905 = vsyncadd [#allocation6], 4294934528 }
  0x13   :  { %906 = dma.done.wait [#allocation9], 128  }
  0x14   :  { %907 = vsyncadd [#allocation9], 4294967168  ;;  %v129_v0 = vld [vmem:[#allocation5 + $0x178] sm:$0xff]  ;;  %v128_v2 = vld [vmem:[#allocation5 + $0x170] sm:$0xff]  ;;  %vm724_vm0 = vcmask 1041408   ;;  %vm726_vm1 = vcmask 1045508  }
  0x15   :  { %v97_v1 = vld [vmem:[#allocation5 + $0x78] sm:$0xff]  ;;  %275 = vmatpush.msra.mxu2 %v129_v0  ;;  %v96_v4 = vld [vmem:[#allocation5 + $0x70] sm:$0xff]  ;;  %v127_v6 = vld [vmem:[#allocation5 + $0x168] sm:$0xff]  ;;  %vm728_vm2 = vcmask 1043456   ;;  %s744_s18 = sshll.u32 %s978_s5, 4  ;;  %s745_s18 = int_to_ptr.hbm [resolvable:$true] %s744_s18 }
  0x16   :  { %235 = vmatpush.msra.mxu0 %v97_v1  ;;  %v145_v3 = vld [vmem:[#allocation5 + $0x1f8] sm:$0xff]  ;;  %v144_v7 = vld [vmem:[#allocation5 + $0x1f0] sm:$0xff]  ;;  %v95_v8 = vld [vmem:[#allocation5 + $0x68] sm:$0xff] }
  0x17   :  { %v113_v5 = vld [vmem:[#allocation5 + $0xf8] sm:$0xff]  ;;  %295 = vmatpush.msra.mxu3 %v145_v3  ;;  %276 = vmatpush.msra.mxu2 %v128_v2  ;;  %v112_v9 = vld [vmem:[#allocation5 + $0xf0] sm:$0xff]  ;;  %v143_v10 = vld [vmem:[#allocation5 + $0x1e8] sm:$0xff] }
  0x18   :  { %255 = vmatpush.msra.mxu1 %v113_v5  ;;  %236 = vmatpush.msra.mxu0 %v96_v4  ;;  %v126_v11 = vld [vmem:[#allocation5 + $0x160] sm:$0xff]  ;;  %v111_v13 = vld [vmem:[#allocation5 + $0xe8] sm:$0xff]  ;;  %v125_v16 = vld [vmem:[#allocation5 + $0x158] sm:$0xff] }
  0x19   :  { %296 = vmatpush.msra.mxu3 %v144_v7  ;;  %v94_v12 = vld [vmem:[#allocation5 + $0x60] sm:$0xff]  ;;  %277 = vmatpush.msra.mxu2 %v127_v6  ;;  %v93_v17 = vld [vmem:[#allocation5 + $0x58] sm:$0xff]  ;;  %v124_v20 = vld [vmem:[#allocation5 + $0x150] sm:$0xff] }
  0x1a   :  { %256 = vmatpush.msra.mxu1 %v112_v9  ;;  %237 = vmatpush.msra.mxu0 %v95_v8  ;;  %v142_v14 = vld [vmem:[#allocation5 + $0x1e0] sm:$0xff]  ;;  %v141_v18 = vld [vmem:[#allocation5 + $0x1d8] sm:$0xff]  ;;  %v92_v21 = vld [vmem:[#allocation5 + $0x50] sm:$0xff] }
  0x1b   :  { %v110_v15 = vld [vmem:[#allocation5 + $0xe0] sm:$0xff]  ;;  %297 = vmatpush.msra.mxu3 %v143_v10  ;;  %278 = vmatpush.msra.mxu2 %v126_v11  ;;  %v109_v19 = vld [vmem:[#allocation5 + $0xd8] sm:$0xff]  ;;  %v140_v22 = vld [vmem:[#allocation5 + $0x1d0] sm:$0xff] }
  0x1c   :  { %257 = vmatpush.msra.mxu1 %v111_v13  ;;  %238 = vmatpush.msra.mxu0 %v94_v12  ;;  %v108_v23 = vld [vmem:[#allocation5 + $0xd0] sm:$0xff]  ;;  %v123_v24 = vld [vmem:[#allocation5 + $0x148] sm:$0xff]  ;;  %v122_v28 = vld [vmem:[#allocation5 + $0x140] sm:$0xff] }
  0x1d   :  { %298 = vmatpush.msra.mxu3 %v142_v14  ;;  %279 = vmatpush.msra.mxu2 %v125_v16  ;;  %v91_v25 = vld [vmem:[#allocation5 + $0x48] sm:$0xff]  ;;  %v90_v29 = vld [vmem:[#allocation5 + $0x40] sm:$0xff]  ;;  %v121_v32 = vld [vmem:[#allocation5 + $0x138] sm:$0xff] }
  0x1e   :  { %258 = vmatpush.msra.mxu1 %v110_v15  ;;  %239 = vmatpush.msra.mxu0 %v93_v17  ;;  %v139_v26 = vld [vmem:[#allocation5 + $0x1c8] sm:$0xff]  ;;  %v138_v30 = vld [vmem:[#allocation5 + $0x1c0] sm:$0xff]  ;;  %v89_v33 = vld [vmem:[#allocation5 + $0x38] sm:$0xff] }
  0x1f   :  { %299 = vmatpush.msra.mxu3 %v141_v18  ;;  %280 = vmatpush.msra.mxu2 %v124_v20  ;;  %v107_v27 = vld [vmem:[#allocation5 + $0xc8] sm:$0xff]  ;;  %v106_v31 = vld [vmem:[#allocation5 + $0xc0] sm:$0xff]  ;;  %v137_v34 = vld [vmem:[#allocation5 + $0x1b8] sm:$0xff] }
  0x20   :  { %259 = vmatpush.msra.mxu1 %v109_v19  ;;  %240 = vmatpush.msra.mxu0 %v92_v21  ;;  %v105_v35 = vld [vmem:[#allocation5 + $0xb8] sm:$0xff]  ;;  %v120_v36 = vld [vmem:[#allocation5 + $0x130] sm:$0xff]  ;;  %v119_v40 = vld [vmem:[#allocation5 + $0x128] sm:$0xff] }
  0x21   :  { %300 = vmatpush.msra.mxu3 %v140_v22  ;;  %281 = vmatpush.msra.mxu2 %v123_v24  ;;  %v88_v37 = vld [vmem:[#allocation5 + $0x30] sm:$0xff]  ;;  %v87_v41 = vld [vmem:[#allocation5 + $0x28] sm:$0xff]  ;;  %v118_v44 = vld [vmem:[#allocation5 + $0x120] sm:$0xff] }
  0x22   :  { %260 = vmatpush.msra.mxu1 %v108_v23  ;;  %241 = vmatpush.msra.mxu0 %v91_v25  ;;  %v136_v38 = vld [vmem:[#allocation5 + $0x1b0] sm:$0xff]  ;;  %v135_v42 = vld [vmem:[#allocation5 + $0x1a8] sm:$0xff]  ;;  %v86_v45 = vld [vmem:[#allocation5 + $0x20] sm:$0xff] }
  0x23   :  { %301 = vmatpush.msra.mxu3 %v139_v26  ;;  %282 = vmatpush.msra.mxu2 %v122_v28  ;;  %v104_v39 = vld [vmem:[#allocation5 + $0xb0] sm:$0xff]  ;;  %v103_v43 = vld [vmem:[#allocation5 + $0xa8] sm:$0xff]  ;;  %v134_v46 = vld [vmem:[#allocation5 + $0x1a0] sm:$0xff] }
  0x24   :  { %261 = vmatpush.msra.mxu1 %v107_v27  ;;  %242 = vmatpush.msra.mxu0 %v90_v29  ;;  %v102_v47 = vld [vmem:[#allocation5 + $0xa0] sm:$0xff]  ;;  %v117_v48 = vld [vmem:[#allocation5 + $0x118] sm:$0xff]  ;;  %v116_v52 = vld [vmem:[#allocation5 + $0x110] sm:$0xff] }
  0x25   :  { %302 = vmatpush.msra.mxu3 %v138_v30  ;;  %283 = vmatpush.msra.mxu2 %v121_v32  ;;  %v85_v49 = vld [vmem:[#allocation5 + $0x18] sm:$0xff]  ;;  %v84_v53 = vld [vmem:[#allocation5 + $0x10] sm:$0xff]  ;;  %v115_v56 = vld [vmem:[#allocation5 + $0x108] sm:$0xff] }
  0x26   :  { %262 = vmatpush.msra.mxu1 %v106_v31  ;;  %243 = vmatpush.msra.mxu0 %v89_v33  ;;  %v133_v50 = vld [vmem:[#allocation5 + $0x198] sm:$0xff]  ;;  %v132_v54 = vld [vmem:[#allocation5 + $0x190] sm:$0xff]  ;;  %v83_v57 = vld [vmem:[#allocation5 + $0x8] sm:$0xff] }
  0x27   :  { %303 = vmatpush.msra.mxu3 %v137_v34  ;;  %284 = vmatpush.msra.mxu2 %v120_v36  ;;  %v101_v51 = vld [vmem:[#allocation5 + $0x98] sm:$0xff]  ;;  %v100_v55 = vld [vmem:[#allocation5 + $0x90] sm:$0xff]  ;;  %v131_v58 = vld [vmem:[#allocation5 + $0x188] sm:$0xff] }
  0x28   :  { %263 = vmatpush.msra.mxu1 %v105_v35  ;;  %244 = vmatpush.msra.mxu0 %v88_v37  ;;  %v99_v59 = vld [vmem:[#allocation5 + $0x88] sm:$0xff]  ;;  %v114_v60 = vld [vmem:[#allocation5 + $0x100] sm:$0xff]  ;;  %v193_v62 = vld [vmem:[#allocation5 + $0x378] sm:$0xff] }
  0x29   :  { %304 = vmatpush.msra.mxu3 %v136_v38  ;;  %285 = vmatpush.msra.mxu2 %v119_v40  ;;  %v82_v61 = vld [vmem:[#allocation5] sm:$0xff]  ;;  %v161_v0 = vld [vmem:[#allocation5 + $0x278] sm:$0xff]  ;;  %v192_v2 = vld [vmem:[#allocation5 + $0x370] sm:$0xff] }
  0x2a   :  { %264 = vmatpush.msra.mxu1 %v104_v39  ;;  %245 = vmatpush.msra.mxu0 %v87_v41  ;;  %v130_v63 = vld [vmem:[#allocation5 + $0x180] sm:$0xff]  ;;  %v209_v1 = vld [vmem:[#allocation5 + $0x3f8] sm:$0xff]  ;;  %v160_v4 = vld [vmem:[#allocation5 + $0x270] sm:$0xff] }
  0x2b   :  { %305 = vmatpush.msra.mxu3 %v135_v42  ;;  %286 = vmatpush.msra.mxu2 %v118_v44  ;;  %v98_v3 = vld [vmem:[#allocation5 + $0x80] sm:$0xff]  ;;  %v177_v5 = vld [vmem:[#allocation5 + $0x2f8] sm:$0xff]  ;;  %v191_v6 = vld [vmem:[#allocation5 + $0x368] sm:$0xff] }
  0x2c   :  { %265 = vmatpush.msra.mxu1 %v103_v43  ;;  %246 = vmatpush.msra.mxu0 %v86_v45  ;;  %v208_v7 = vld [vmem:[#allocation5 + $0x3f0] sm:$0xff]  ;;  %v159_v8 = vld [vmem:[#allocation5 + $0x268] sm:$0xff]  ;;  %v190_v10 = vld [vmem:[#allocation5 + $0x360] sm:$0xff] }
  0x2d   :  { %306 = vmatpush.msra.mxu3 %v134_v46  ;;  %287 = vmatpush.msra.mxu2 %v117_v48  ;;  %v176_v9 = vld [vmem:[#allocation5 + $0x2f0] sm:$0xff]  ;;  %v207_v11 = vld [vmem:[#allocation5 + $0x3e8] sm:$0xff]  ;;  %v158_v12 = vld [vmem:[#allocation5 + $0x260] sm:$0xff] }
  0x2e   :  { %266 = vmatpush.msra.mxu1 %v102_v47  ;;  %247 = vmatpush.msra.mxu0 %v85_v49  ;;  %v175_v13 = vld [vmem:[#allocation5 + $0x2e8] sm:$0xff]  ;;  %v80_v14 = vld [vmem:[#allocation2] sm:$0xff]  ;;  %v189_v15 = vld [vmem:[#allocation5 + $0x358] sm:$0xff] }
  0x2f   :  { %307 = vmatpush.msra.mxu3 %v133_v50  ;;  %288 = vmatpush.msra.mxu2 %v116_v52  ;;  %v206_v16 = vld [vmem:[#allocation5 + $0x3e0] sm:$0xff]  ;;  %216 = vst [vmem:[#allocation1] ss:$4 sm:$0xff] %v80_v14  ;;  %v157_v17 = vld [vmem:[#allocation5 + $0x258] sm:$0xff]  ;;  %v188_v19 = vld [vmem:[#allocation5 + $0x350] sm:$0xff] }
  0x30   :  { %267 = vmatpush.msra.mxu1 %v101_v51  ;;  %248 = vmatpush.msra.mxu0 %v84_v53  ;;  %v174_v18 = vld [vmem:[#allocation5 + $0x2e0] sm:$0xff]  ;;  %v205_v20 = vld [vmem:[#allocation5 + $0x3d8] sm:$0xff]  ;;  %v156_v21 = vld [vmem:[#allocation5 + $0x250] sm:$0xff] }
  0x31   :  { %308 = vmatpush.msra.mxu3 %v132_v54  ;;  %289 = vmatpush.msra.mxu2 %v115_v56  ;;  %v173_v22 = vld [vmem:[#allocation5 + $0x2d8] sm:$0xff]  ;;  %v187_v23 = vld [vmem:[#allocation5 + $0x348] sm:$0xff]  ;;  %v204_v24 = vld [vmem:[#allocation5 + $0x3d0] sm:$0xff] }
  0x32   :  { %268 = vmatpush.msra.mxu1 %v100_v55  ;;  %249 = vmatpush.msra.mxu0 %v83_v57  ;;  %v81_v25 = vld [vmem:[#allocation2 + $0x8] sm:$0xff]  ;;  %v155_v26 = vld [vmem:[#allocation5 + $0x248] sm:$0xff]  ;;  %v172_v27 = vld [vmem:[#allocation5 + $0x2d0] sm:$0xff] }
  0x33   :  { %309 = vmatpush.msra.mxu3 %v131_v58  ;;  %290 = vmatpush.msra.mxu2 %v114_v60  ;;  %218 = vst [vmem:[#allocation1 + $0x20] ss:$4 sm:$0xff] %v81_v25  ;;  %v186_v28 = vld [vmem:[#allocation5 + $0x340] sm:$0xff]  ;;  %v203_v29 = vld [vmem:[#allocation5 + $0x3c8] sm:$0xff]  ;;  %v185_v32 = vld [vmem:[#allocation5 + $0x338] sm:$0xff] }
  0x34   :  { %269 = vmatpush.msra.mxu1 %v99_v59  ;;  %250 = vmatpush.msra.mxu0 %v82_v61  ;;  %v154_v30 = vld [vmem:[#allocation5 + $0x240] sm:$0xff]  ;;  %v171_v31 = vld [vmem:[#allocation5 + $0x2c8] sm:$0xff]  ;;  %v153_v34 = vld [vmem:[#allocation5 + $0x238] sm:$0xff] }
  0x35   :  { %355 = vmatpush.msrb.mxu2 %v193_v62  ;;  %310 = vmatpush.msra.mxu3 %v130_v63  ;;  %v202_v33 = vld [vmem:[#allocation5 + $0x3c0] sm:$0xff]  ;;  %v184_v36 = vld [vmem:[#allocation5 + $0x330] sm:$0xff]  ;;  %v201_v37 = vld [vmem:[#allocation5 + $0x3b8] sm:$0xff] }
  0x36   :  { %315 = vmatpush.msrb.mxu0 %v161_v0  ;;  %270 = vmatpush.msra.mxu1 %v98_v3  ;;  %v170_v35 = vld [vmem:[#allocation5 + $0x2c0] sm:$0xff]  ;;  %v152_v38 = vld [vmem:[#allocation5 + $0x230] sm:$0xff]  ;;  %v169_v39 = vld [vmem:[#allocation5 + $0x2b8] sm:$0xff] }
  0x37   :  { %375 = vmatpush.msrb.mxu3 %v209_v1  ;;  %356 = vmatpush.msrb.mxu2 %v192_v2  ;;  %v183_v40 = vld [vmem:[#allocation5 + $0x328] sm:$0xff]  ;;  %v200_v41 = vld [vmem:[#allocation5 + $0x3b0] sm:$0xff]  ;;  %v182_v44 = vld [vmem:[#allocation5 + $0x320] sm:$0xff] }
  0x38   :  { %316 = vmatpush.msrb.mxu0 %v160_v4  ;;  %335 = vmatpush.msrb.mxu1 %v177_v5  ;;  %v151_v42 = vld [vmem:[#allocation5 + $0x228] sm:$0xff]  ;;  %v168_v43 = vld [vmem:[#allocation5 + $0x2b0] sm:$0xff]  ;;  %v221_v46 = vld.sshfl [vmem:[#allocation1 + $0x10] sm:$0xff pattern:$0x73625140] }
  0x39   :  { %357 = vmatpush.msrb.mxu2 %v191_v6  ;;  %376 = vmatpush.msrb.mxu3 %v208_v7  ;;  %v199_v45 = vld [vmem:[#allocation5 + $0x3a8] sm:$0xff]  ;;  %v150_v47 = vld [vmem:[#allocation5 + $0x220] sm:$0xff]  ;;  %v181_v49 = vld [vmem:[#allocation5 + $0x318] sm:$0xff] }
  0x3a   :  { %317 = vmatpush.msrb.mxu0 %v159_v8  ;;  %336 = vmatpush.msrb.mxu1 %v176_v9  ;;  %v167_v48 = vld [vmem:[#allocation5 + $0x2a8] sm:$0xff]  ;;  %v198_v50 = vld [vmem:[#allocation5 + $0x3a0] sm:$0xff]  ;;  %v149_v53 = vld [vmem:[#allocation5 + $0x218] sm:$0xff] }
  0x3b   :  { %358 = vmatpush.msrb.mxu2 %v190_v10  ;;  %377 = vmatpush.msrb.mxu3 %v207_v11  ;;  %v219_v51 = vld.sshfl [vmem:[#allocation1] sm:$0xff pattern:$0x73625140]  ;;  %v222_v52 = vld.sshfl [vmem:[#allocation1 + $0x18] sm:$0xff pattern:$0x73625140] }
  0x3c   :  { %318 = vmatpush.msrb.mxu0 %v158_v12  ;;  %337 = vmatpush.msrb.mxu1 %v175_v13  ;;  %v166_v54 = vld [vmem:[#allocation5 + $0x2a0] sm:$0xff]  ;;  %v180_v55 = vld [vmem:[#allocation5 + $0x310] sm:$0xff]  ;;  %v197_v56 = vld [vmem:[#allocation5 + $0x398] sm:$0xff] }
  0x3d   :  { %359 = vmatpush.msrb.mxu2 %v189_v15  ;;  %378 = vmatpush.msrb.mxu3 %v206_v16  ;;  %v220_v57 = vld.sshfl [vmem:[#allocation1 + $0x8] sm:$0xff pattern:$0x73625140]  ;;  %v165_v59 = vld [vmem:[#allocation5 + $0x298] sm:$0xff]  ;;  %v179_v60 = vld [vmem:[#allocation5 + $0x308] sm:$0xff] }
  0x3e   :  { %319 = vmatpush.msrb.mxu0 %v157_v17  ;;  %338 = vmatpush.msrb.mxu1 %v174_v18  ;;  %v148_v58 = vld [vmem:[#allocation5 + $0x210] sm:$0xff]  ;;  %v147_v62 = vld [vmem:[#allocation5 + $0x208] sm:$0xff]  ;;  %v178_v0 = vld [vmem:[#allocation5 + $0x300] sm:$0xff] }
  0x3f   :  { %360 = vmatpush.msrb.mxu2 %v188_v19  ;;  %379 = vmatpush.msrb.mxu3 %v205_v20  ;;  %v196_v61 = vld [vmem:[#allocation5 + $0x390] sm:$0xff]  ;;  %v195_v1 = vld [vmem:[#allocation5 + $0x388] sm:$0xff]  ;;  %v225_v2 = vld.sshfl [vmem:[#allocation1 + $0x30] sm:$0xff pattern:$0x73625140] }
  0x40   :  { %320 = vmatpush.msrb.mxu0 %v156_v21  ;;  %339 = vmatpush.msrb.mxu1 %v173_v22  ;;  %v164_v63 = vld [vmem:[#allocation5 + $0x290] sm:$0xff]  ;;  %v146_v3 = vld [vmem:[#allocation5 + $0x200] sm:$0xff]  ;;  %v163_v4 = vld [vmem:[#allocation5 + $0x288] sm:$0xff] }
  0x41   :  { %361 = vmatpush.msrb.mxu2 %v187_v23  ;;  %380 = vmatpush.msrb.mxu3 %v204_v24  ;;  %v194_v5 = vld [vmem:[#allocation5 + $0x380] sm:$0xff]  ;;  %v223_v6 = vld.sshfl [vmem:[#allocation1 + $0x20] sm:$0xff pattern:$0x73625140]  ;;  %v518_v11 = vld [vmem:[#allocation7 + $0x3d0] sm:$0xff] }
  0x42   :  { %321 = vmatpush.msrb.mxu0 %v155_v26  ;;  %340 = vmatpush.msrb.mxu1 %v172_v27  ;;  %v226_v7 = vld.sshfl [vmem:[#allocation1 + $0x38] sm:$0xff pattern:$0x73625140]  ;;  %v224_v10 = vld.sshfl [vmem:[#allocation1 + $0x28] sm:$0xff pattern:$0x73625140] }
  0x43   :  { %362 = vmatpush.msrb.mxu2 %v186_v28  ;;  %381 = vmatpush.msrb.mxu3 %v203_v29  ;;  %v162_v8 = vld [vmem:[#allocation5 + $0x280] sm:$0xff]  ;;  %v517_v12 = vld [vmem:[#allocation7 + $0x3c8] sm:$0xff]  ;;  %v519_v13 = vld [vmem:[#allocation7 + $0x3d8] sm:$0xff] }
  0x44   :  { %322 = vmatpush.msrb.mxu0 %v154_v30  ;;  %341 = vmatpush.msrb.mxu1 %v171_v31  ;;  %v516_v9 = vld [vmem:[#allocation7 + $0x3c0] sm:$0xff]  ;;  %v510_v15 = vld [vmem:[#allocation7 + $0x390] sm:$0xff]  ;;  %v509_v16 = vld [vmem:[#allocation7 + $0x388] sm:$0xff] }
  0x45   :  { %363 = vmatpush.msrb.mxu2 %v185_v32  ;;  %382 = vmatpush.msrb.mxu3 %v202_v33  ;;  %v508_v14 = vld [vmem:[#allocation7 + $0x380] sm:$0xff]  ;;  %v511_v17 = vld [vmem:[#allocation7 + $0x398] sm:$0xff]  ;;  %v502_v19 = vld [vmem:[#allocation7 + $0x350] sm:$0xff] }
  0x46   :  { %323 = vmatpush.msrb.mxu0 %v153_v34  ;;  %342 = vmatpush.msrb.mxu1 %v170_v35  ;;  %v500_v18 = vld [vmem:[#allocation7 + $0x340] sm:$0xff]  ;;  %v501_v20 = vld [vmem:[#allocation7 + $0x348] sm:$0xff]  ;;  %v503_v21 = vld [vmem:[#allocation7 + $0x358] sm:$0xff] }
  0x47   :  { %364 = vmatpush.msrb.mxu2 %v184_v36  ;;  %383 = vmatpush.msrb.mxu3 %v201_v37  ;;  %v492_v22 = vld [vmem:[#allocation7 + $0x300] sm:$0xff]  ;;  %v494_v23 = vld [vmem:[#allocation7 + $0x310] sm:$0xff]  ;;  %v493_v24 = vld [vmem:[#allocation7 + $0x308] sm:$0xff] }
  0x48   :  { %324 = vmatpush.msrb.mxu0 %v152_v38  ;;  %343 = vmatpush.msrb.mxu1 %v169_v39  ;;  %v495_v25 = vld [vmem:[#allocation7 + $0x318] sm:$0xff]  ;;  %v484_v26 = vld [vmem:[#allocation7 + $0x2c0] sm:$0xff]  ;;  %v486_v27 = vld [vmem:[#allocation7 + $0x2d0] sm:$0xff] }
  0x49   :  { %365 = vmatpush.msrb.mxu2 %v183_v40  ;;  %384 = vmatpush.msrb.mxu3 %v200_v41  ;;  %v485_v28 = vld [vmem:[#allocation7 + $0x2c8] sm:$0xff]  ;;  %v487_v29 = vld [vmem:[#allocation7 + $0x2d8] sm:$0xff]  ;;  %v476_v30 = vld [vmem:[#allocation7 + $0x280] sm:$0xff] }
  0x4a   :  { %325 = vmatpush.msrb.mxu0 %v151_v42  ;;  %344 = vmatpush.msrb.mxu1 %v168_v43  ;;  %v478_v31 = vld [vmem:[#allocation7 + $0x290] sm:$0xff]  ;;  %v477_v32 = vld [vmem:[#allocation7 + $0x288] sm:$0xff]  ;;  %v479_v33 = vld [vmem:[#allocation7 + $0x298] sm:$0xff] }
  0x4b   :  { %366 = vmatpush.msrb.mxu2 %v182_v44  ;;  %385 = vmatpush.msrb.mxu3 %v199_v45  ;;  %v468_v34 = vld [vmem:[#allocation7 + $0x240] sm:$0xff]  ;;  %v470_v35 = vld [vmem:[#allocation7 + $0x250] sm:$0xff]  ;;  %v469_v36 = vld [vmem:[#allocation7 + $0x248] sm:$0xff] }
  0x4c   :  { %291 = vmatmul.f32.vlgmr.msra.gmra.mxu2 %v221_v46  ;;  %326 = vmatpush.msrb.mxu0 %v150_v47  ;;  %v471_v37 = vld [vmem:[#allocation7 + $0x258] sm:$0xff]  ;;  %v460_v38 = vld [vmem:[#allocation7 + $0x200] sm:$0xff]  ;;  %v462_v39 = vld [vmem:[#allocation7 + $0x210] sm:$0xff] }
  0x4d   :  { %345 = vmatpush.msrb.mxu1 %v167_v48  ;;  %367 = vmatpush.msrb.mxu2 %v181_v49  ;;  %v461_v40 = vld [vmem:[#allocation7 + $0x208] sm:$0xff]  ;;  %v463_v41 = vld [vmem:[#allocation7 + $0x218] sm:$0xff]  ;;  %v452_v42 = vld [vmem:[#allocation7 + $0x1c0] sm:$0xff] }
  0x4e   :  { %386 = vmatpush.msrb.mxu3 %v198_v50  ;;  %251 = vmatmul.f32.vlgmr.msra.gmra.mxu0 %v219_v51  ;;  %v454_v43 = vld [vmem:[#allocation7 + $0x1d0] sm:$0xff]  ;;  %v453_v44 = vld [vmem:[#allocation7 + $0x1c8] sm:$0xff]  ;;  %v455_v45 = vld [vmem:[#allocation7 + $0x1d8] sm:$0xff] }
  0x4f   :  { %311 = vmatmul.f32.vlgmr.msra.gmra.mxu3 %v222_v52  ;;  %327 = vmatpush.msrb.mxu0 %v149_v53  ;;  %v444_v46 = vld [vmem:[#allocation7 + $0x180] sm:$0xff]  ;;  %v446_v47 = vld [vmem:[#allocation7 + $0x190] sm:$0xff]  ;;  %v445_v48 = vld [vmem:[#allocation7 + $0x188] sm:$0xff] }
  0x50   :  { %346 = vmatpush.msrb.mxu1 %v166_v54  ;;  %368 = vmatpush.msrb.mxu2 %v180_v55  ;;  %v447_v49 = vld [vmem:[#allocation7 + $0x198] sm:$0xff]  ;;  %v436_v50 = vld [vmem:[#allocation7 + $0x140] sm:$0xff]  ;;  %v438_v51 = vld [vmem:[#allocation7 + $0x150] sm:$0xff] }
  0x51   :  { %387 = vmatpush.msrb.mxu3 %v197_v56  ;;  %271 = vmatmul.f32.vlgmr.msra.gmra.mxu1 %v220_v57  ;;  %v437_v52 = vld [vmem:[#allocation7 + $0x148] sm:$0xff]  ;;  %v439_v53 = vld [vmem:[#allocation7 + $0x158] sm:$0xff]  ;;  %v428_v54 = vld [vmem:[#allocation7 + $0x100] sm:$0xff] }
  0x52   :  { %328 = vmatpush.msrb.mxu0 %v148_v58  ;;  %347 = vmatpush.msrb.mxu1 %v165_v59  ;;  %v430_v55 = vld [vmem:[#allocation7 + $0x110] sm:$0xff]  ;;  %v429_v56 = vld [vmem:[#allocation7 + $0x108] sm:$0xff]  ;;  %v431_v57 = vld [vmem:[#allocation7 + $0x118] sm:$0xff] }
  0x53   :  { %369 = vmatpush.msrb.mxu2 %v179_v60  ;;  %388 = vmatpush.msrb.mxu3 %v196_v61  ;;  %v420_v58 = vld [vmem:[#allocation7 + $0xc0] sm:$0xff]  ;;  %v422_v59 = vld [vmem:[#allocation7 + $0xd0] sm:$0xff]  ;;  %v421_v60 = vld [vmem:[#allocation7 + $0xc8] sm:$0xff] }
  0x54   :  { %329 = vmatpush.msrb.mxu0 %v147_v62  ;;  %348 = vmatpush.msrb.mxu1 %v164_v63  ;;  %v423_v61 = vld [vmem:[#allocation7 + $0xd8] sm:$0xff]  ;;  %v412_v62 = vld [vmem:[#allocation7 + $0x80] sm:$0xff]  ;;  %v414_v63 = vld [vmem:[#allocation7 + $0x90] sm:$0xff] }
  0x55   :  { %370 = vmatpush.msrb.mxu2 %v178_v0  ;;  %389 = vmatpush.msrb.mxu3 %v195_v1  ;;  %v413_v0 = vld [vmem:[#allocation7 + $0x88] sm:$0xff]  ;;  %v415_v1 = vld [vmem:[#allocation7 + $0x98] sm:$0xff] }
  0x56   :  { %371 = vmatmul.f32.vlgmr.msrb.gmra.mxu2 %v225_v2  ;;  %330 = vmatpush.msrb.mxu0 %v146_v3  ;;  %v404_v2 = vld [vmem:[#allocation7 + $0x40] sm:$0xff]  ;;  %v406_v3 = vld [vmem:[#allocation7 + $0x50] sm:$0xff] }
  0x57   :  { %349 = vmatpush.msrb.mxu1 %v163_v4  ;;  %390 = vmatpush.msrb.mxu3 %v194_v5  ;;  %v405_v4 = vld [vmem:[#allocation7 + $0x48] sm:$0xff]  ;;  %v407_v5 = vld [vmem:[#allocation7 + $0x58] sm:$0xff] }
  0x58   :  { %331 = vmatmul.f32.vlgmr.msrb.gmra.mxu0 %v223_v6  ;;  %391 = vmatmul.f32.vlgmr.msrb.gmra.mxu3 %v226_v7  ;;  %v396_v6 = vld [vmem:[#allocation7] sm:$0xff]  ;;  %v398_v7 = vld [vmem:[#allocation7 + $0x10] sm:$0xff] }
  0x59   :  { %350 = vmatpush.msrb.mxu1 %v162_v8  ;;  %542 = vmatpush.msra.mxu0 %v516_v9  ;;  %v397_v8 = vld [vmem:[#allocation7 + $0x8] sm:$0xff]  ;;  %v399_v9 = vld [vmem:[#allocation7 + $0x18] sm:$0xff] }
  0x5a   :  { %351 = vmatmul.f32.vlgmr.msrb.gmra.mxu1 %v224_v10  ;;  %582 = vmatpush.msra.mxu2 %v518_v11  ;;  %v520_v10 = vld [vmem:[#allocation7 + $0x3e0] sm:$0xff]  ;;  %v521_v11 = vld [vmem:[#allocation7 + $0x3e8] sm:$0xff] }
  0x5b   :  { %562 = vmatpush.msra.mxu1 %v517_v12  ;;  %602 = vmatpush.msra.mxu3 %v519_v13  ;;  %v522_v12 = vld [vmem:[#allocation7 + $0x3f0] sm:$0xff]  ;;  %v523_v13 = vld [vmem:[#allocation7 + $0x3f8] sm:$0xff] }
  0x5c   :  { %543 = vmatpush.msra.mxu0 %v508_v14  ;;  %583 = vmatpush.msra.mxu2 %v510_v15  ;;  %v512_v14 = vld [vmem:[#allocation7 + $0x3a0] sm:$0xff]  ;;  %v513_v15 = vld [vmem:[#allocation7 + $0x3a8] sm:$0xff] }
  0x5d   :  { %563 = vmatpush.msra.mxu1 %v509_v16  ;;  %603 = vmatpush.msra.mxu3 %v511_v17  ;;  %v514_v16 = vld [vmem:[#allocation7 + $0x3b0] sm:$0xff]  ;;  %v515_v17 = vld [vmem:[#allocation7 + $0x3b8] sm:$0xff] }
  0x5e   :  { %544 = vmatpush.msra.mxu0 %v500_v18  ;;  %584 = vmatpush.msra.mxu2 %v502_v19  ;;  %v504_v18 = vld [vmem:[#allocation7 + $0x360] sm:$0xff]  ;;  %v505_v19 = vld [vmem:[#allocation7 + $0x368] sm:$0xff] }
  0x5f   :  { %564 = vmatpush.msra.mxu1 %v501_v20  ;;  %604 = vmatpush.msra.mxu3 %v503_v21  ;;  %v506_v20 = vld [vmem:[#allocation7 + $0x370] sm:$0xff]  ;;  %v507_v21 = vld [vmem:[#allocation7 + $0x378] sm:$0xff] }
  0x60   :  { %545 = vmatpush.msra.mxu0 %v492_v22  ;;  %585 = vmatpush.msra.mxu2 %v494_v23  ;;  %v496_v22 = vld [vmem:[#allocation7 + $0x320] sm:$0xff]  ;;  %v497_v23 = vld [vmem:[#allocation7 + $0x328] sm:$0xff] }
  0x61   :  { %565 = vmatpush.msra.mxu1 %v493_v24  ;;  %605 = vmatpush.msra.mxu3 %v495_v25  ;;  %v498_v24 = vld [vmem:[#allocation7 + $0x330] sm:$0xff]  ;;  %v499_v25 = vld [vmem:[#allocation7 + $0x338] sm:$0xff] }
  0x62   :  { %546 = vmatpush.msra.mxu0 %v484_v26  ;;  %586 = vmatpush.msra.mxu2 %v486_v27  ;;  %v488_v26 = vld [vmem:[#allocation7 + $0x2e0] sm:$0xff]  ;;  %v489_v27 = vld [vmem:[#allocation7 + $0x2e8] sm:$0xff] }
  0x63   :  { %566 = vmatpush.msra.mxu1 %v485_v28  ;;  %606 = vmatpush.msra.mxu3 %v487_v29  ;;  %v490_v28 = vld [vmem:[#allocation7 + $0x2f0] sm:$0xff]  ;;  %v491_v29 = vld [vmem:[#allocation7 + $0x2f8] sm:$0xff] }
  0x64   :  { %547 = vmatpush.msra.mxu0 %v476_v30  ;;  %587 = vmatpush.msra.mxu2 %v478_v31  ;;  %v480_v30 = vld [vmem:[#allocation7 + $0x2a0] sm:$0xff]  ;;  %v481_v31 = vld [vmem:[#allocation7 + $0x2a8] sm:$0xff] }
  0x65   :  { %567 = vmatpush.msra.mxu1 %v477_v32  ;;  %607 = vmatpush.msra.mxu3 %v479_v33  ;;  %v482_v32 = vld [vmem:[#allocation7 + $0x2b0] sm:$0xff]  ;;  %v483_v33 = vld [vmem:[#allocation7 + $0x2b8] sm:$0xff] }
  0x66   :  { %548 = vmatpush.msra.mxu0 %v468_v34  ;;  %588 = vmatpush.msra.mxu2 %v470_v35  ;;  %v472_v34 = vld [vmem:[#allocation7 + $0x260] sm:$0xff]  ;;  %v473_v35 = vld [vmem:[#allocation7 + $0x268] sm:$0xff] }
  0x67   :  { %568 = vmatpush.msra.mxu1 %v469_v36  ;;  %608 = vmatpush.msra.mxu3 %v471_v37  ;;  %v474_v36 = vld [vmem:[#allocation7 + $0x270] sm:$0xff]  ;;  %v475_v37 = vld [vmem:[#allocation7 + $0x278] sm:$0xff] }
  0x68   :  { %549 = vmatpush.msra.mxu0 %v460_v38  ;;  %589 = vmatpush.msra.mxu2 %v462_v39  ;;  %v464_v38 = vld [vmem:[#allocation7 + $0x220] sm:$0xff]  ;;  %v465_v39 = vld [vmem:[#allocation7 + $0x228] sm:$0xff] }
  0x69   :  { %569 = vmatpush.msra.mxu1 %v461_v40  ;;  %609 = vmatpush.msra.mxu3 %v463_v41  ;;  %v466_v40 = vld [vmem:[#allocation7 + $0x230] sm:$0xff]  ;;  %v467_v41 = vld [vmem:[#allocation7 + $0x238] sm:$0xff] }
  0x6a   :  { %550 = vmatpush.msra.mxu0 %v452_v42  ;;  %590 = vmatpush.msra.mxu2 %v454_v43  ;;  %v456_v42 = vld [vmem:[#allocation7 + $0x1e0] sm:$0xff]  ;;  %v457_v43 = vld [vmem:[#allocation7 + $0x1e8] sm:$0xff] }
  0x6b   :  { %570 = vmatpush.msra.mxu1 %v453_v44  ;;  %610 = vmatpush.msra.mxu3 %v455_v45  ;;  %v458_v44 = vld [vmem:[#allocation7 + $0x1f0] sm:$0xff]  ;;  %v459_v45 = vld [vmem:[#allocation7 + $0x1f8] sm:$0xff] }
  0x6c   :  { %551 = vmatpush.msra.mxu0 %v444_v46  ;;  %591 = vmatpush.msra.mxu2 %v446_v47  ;;  %v448_v46 = vld [vmem:[#allocation7 + $0x1a0] sm:$0xff]  ;;  %v449_v47 = vld [vmem:[#allocation7 + $0x1a8] sm:$0xff] }
  0x6d   :  { %571 = vmatpush.msra.mxu1 %v445_v48  ;;  %611 = vmatpush.msra.mxu3 %v447_v49  ;;  %v450_v48 = vld [vmem:[#allocation7 + $0x1b0] sm:$0xff]  ;;  %v451_v49 = vld [vmem:[#allocation7 + $0x1b8] sm:$0xff] }
  0x6e   :  { %552 = vmatpush.msra.mxu0 %v436_v50  ;;  %592 = vmatpush.msra.mxu2 %v438_v51  ;;  %v440_v50 = vld [vmem:[#allocation7 + $0x160] sm:$0xff]  ;;  %v441_v51 = vld [vmem:[#allocation7 + $0x168] sm:$0xff] }
  0x6f   :  { %572 = vmatpush.msra.mxu1 %v437_v52  ;;  %612 = vmatpush.msra.mxu3 %v439_v53  ;;  %v442_v52 = vld [vmem:[#allocation7 + $0x170] sm:$0xff]  ;;  %v443_v53 = vld [vmem:[#allocation7 + $0x178] sm:$0xff] }
  0x70   :  { %553 = vmatpush.msra.mxu0 %v428_v54  ;;  %593 = vmatpush.msra.mxu2 %v430_v55  ;;  %v432_v54 = vld [vmem:[#allocation7 + $0x120] sm:$0xff]  ;;  %v433_v55 = vld [vmem:[#allocation7 + $0x128] sm:$0xff] }
  0x71   :  { %573 = vmatpush.msra.mxu1 %v429_v56  ;;  %613 = vmatpush.msra.mxu3 %v431_v57  ;;  %v434_v56 = vld [vmem:[#allocation7 + $0x130] sm:$0xff]  ;;  %v435_v57 = vld [vmem:[#allocation7 + $0x138] sm:$0xff] }
  0x72   :  { %554 = vmatpush.msra.mxu0 %v420_v58  ;;  %594 = vmatpush.msra.mxu2 %v422_v59  ;;  %v424_v58 = vld [vmem:[#allocation7 + $0xe0] sm:$0xff]  ;;  %v425_v59 = vld [vmem:[#allocation7 + $0xe8] sm:$0xff] }
  0x73   :  { %574 = vmatpush.msra.mxu1 %v421_v60  ;;  %614 = vmatpush.msra.mxu3 %v423_v61  ;;  %v426_v60 = vld [vmem:[#allocation7 + $0xf0] sm:$0xff]  ;;  %v427_v61 = vld [vmem:[#allocation7 + $0xf8] sm:$0xff] }
  0x74   :  { %555 = vmatpush.msra.mxu0 %v412_v62  ;;  %595 = vmatpush.msra.mxu2 %v414_v63  ;;  %v416_v62 = vld [vmem:[#allocation7 + $0xa0] sm:$0xff]  ;;  %v417_v63 = vld [vmem:[#allocation7 + $0xa8] sm:$0xff] }
  0x75   :  { %575 = vmatpush.msra.mxu1 %v413_v0  ;;  %615 = vmatpush.msra.mxu3 %v415_v1  ;;  %v418_v0 = vld [vmem:[#allocation7 + $0xb0] sm:$0xff]  ;;  %v419_v1 = vld [vmem:[#allocation7 + $0xb8] sm:$0xff] }
  0x76   :  { %556 = vmatpush.msra.mxu0 %v404_v2  ;;  %596 = vmatpush.msra.mxu2 %v406_v3  ;;  %v408_v2 = vld [vmem:[#allocation7 + $0x60] sm:$0xff]  ;;  %v409_v3 = vld [vmem:[#allocation7 + $0x68] sm:$0xff] }
  0x77   :  { %576 = vmatpush.msra.mxu1 %v405_v4  ;;  %616 = vmatpush.msra.mxu3 %v407_v5  ;;  %v410_v4 = vld [vmem:[#allocation7 + $0x70] sm:$0xff]  ;;  %v411_v5 = vld [vmem:[#allocation7 + $0x78] sm:$0xff] }
  0x78   :  { %557 = vmatpush.msra.mxu0 %v396_v6  ;;  %597 = vmatpush.msra.mxu2 %v398_v7  ;;  %v400_v6 = vld [vmem:[#allocation7 + $0x20] sm:$0xff]  ;;  %v401_v7 = vld [vmem:[#allocation7 + $0x28] sm:$0xff] }
  0x79   :  { %577 = vmatpush.msra.mxu1 %v397_v8  ;;  %617 = vmatpush.msra.mxu3 %v399_v9  ;;  %v402_v8 = vld [vmem:[#allocation7 + $0x30] sm:$0xff]  ;;  %v403_v9 = vld [vmem:[#allocation7 + $0x38] sm:$0xff] }
  0x7a   :  { %622 = vmatpush.msrb.mxu0 %v520_v10  ;;  %662 = vmatpush.msrb.mxu2 %v522_v12  ;;  %v765_v10 = vld [vmem:[%s975_s2] ss:$0 sm:$0xff]  ;;  %s918_s2 = smov [#allocation10]  }
  0x7b   :  { %642 = vmatpush.msrb.mxu1 %v521_v11  ;;  %682 = vmatpush.msrb.mxu3 %v523_v13  ;;  %s742_s15 = sshll.u32 %s918_s2, 4  ;;  %s743_s15 = int_to_ptr.vmem [resolvable:$true] %s742_s15 }
  0x7c   :  { %623 = vmatpush.msrb.mxu0 %v512_v14  ;;  %663 = vmatpush.msrb.mxu2 %v514_v16 }
  0x7d   :  { %643 = vmatpush.msrb.mxu1 %v513_v15  ;;  %683 = vmatpush.msrb.mxu3 %v515_v17 }
  0x7e   :  { %624 = vmatpush.msrb.mxu0 %v504_v18  ;;  %664 = vmatpush.msrb.mxu2 %v506_v20 }
  0x7f   :  { %644 = vmatpush.msrb.mxu1 %v505_v19  ;;  %684 = vmatpush.msrb.mxu3 %v507_v21 }
  0x80   :  { %625 = vmatpush.msrb.mxu0 %v496_v22  ;;  %665 = vmatpush.msrb.mxu2 %v498_v24 }
  0x81   :  { %645 = vmatpush.msrb.mxu1 %v497_v23  ;;  %685 = vmatpush.msrb.mxu3 %v499_v25 }
  0x82   :  { %626 = vmatpush.msrb.mxu0 %v488_v26  ;;  %666 = vmatpush.msrb.mxu2 %v490_v28  ;;  %v524_v28 = vld [vmem:[#allocation8] sm:$0xff] }
  0x83   :  { %646 = vmatpush.msrb.mxu1 %v489_v27  ;;  %686 = vmatpush.msrb.mxu3 %v491_v29  ;;  %v527_v29 = vperm.slane %v524_v28, 1 }
  0x84   :  { %627 = vmatpush.msrb.mxu0 %v480_v30  ;;  %667 = vmatpush.msrb.mxu2 %v482_v32 }
  0x85   :  { %647 = vmatpush.msrb.mxu1 %v481_v31  ;;  %687 = vmatpush.msrb.mxu3 %v483_v33  ;;  %v528_v33 = vperm.slane %v524_v28, 2 }
  0x86   :  { %628 = vmatpush.msrb.mxu0 %v472_v34  ;;  %668 = vmatpush.msrb.mxu2 %v474_v36  ;;  %v529_v34 = vperm.slane %v524_v28, 3 }
  0x87   :  { %648 = vmatpush.msrb.mxu1 %v473_v35  ;;  %688 = vmatpush.msrb.mxu3 %v475_v37  ;;  %v526_v35 = vperm.slane %v524_v28, 0 }
  0x88   :  { %629 = vmatpush.msrb.mxu0 %v464_v38  ;;  %669 = vmatpush.msrb.mxu2 %v466_v40  ;;  %v531_v38 = vperm.slane %v524_v28, 5 }
  0x89   :  { %649 = vmatpush.msrb.mxu1 %v465_v39  ;;  %689 = vmatpush.msrb.mxu3 %v467_v41 }
  0x8a   :  { %630 = vmatpush.msrb.mxu0 %v456_v42  ;;  %670 = vmatpush.msrb.mxu2 %v458_v44  ;;  %v532_v44 = vperm.slane %v524_v28, 6 }
  0x8b   :  { %650 = vmatpush.msrb.mxu1 %v457_v43  ;;  %690 = vmatpush.msrb.mxu3 %v459_v45  ;;  %v533_v45 = vperm.slane %v524_v28, 7 }
  0x8c   :  { %631 = vmatpush.msrb.mxu0 %v448_v46  ;;  %671 = vmatpush.msrb.mxu2 %v450_v48 }
  0x8d   :  { %651 = vmatpush.msrb.mxu1 %v449_v47  ;;  %691 = vmatpush.msrb.mxu3 %v451_v49  ;;  %v530_v47 = vperm.slane %v524_v28, 4 }
  0x8e   :  { %632 = vmatpush.msrb.mxu0 %v440_v50  ;;  %672 = vmatpush.msrb.mxu2 %v442_v52 }
  0x8f   :  { %652 = vmatpush.msrb.mxu1 %v441_v51  ;;  %692 = vmatpush.msrb.mxu3 %v443_v53 }
  0x90   :  { %633 = vmatpush.msrb.mxu0 %v432_v54  ;;  %673 = vmatpush.msrb.mxu2 %v434_v56 }
  0x91   :  { %653 = vmatpush.msrb.mxu1 %v433_v55  ;;  %693 = vmatpush.msrb.mxu3 %v435_v57 }
  0x92   :  { %634 = vmatpush.msrb.mxu0 %v424_v58  ;;  %674 = vmatpush.msrb.mxu2 %v426_v60 }
  0x93   :  { %654 = vmatpush.msrb.mxu1 %v425_v59  ;;  %694 = vmatpush.msrb.mxu3 %v427_v61 }
  0x94   :  { %635 = vmatpush.msrb.mxu0 %v416_v62  ;;  %675 = vmatpush.msrb.mxu2 %v418_v0 }
  0x95   :  { %655 = vmatpush.msrb.mxu1 %v417_v63  ;;  %695 = vmatpush.msrb.mxu3 %v419_v1 }
  0x96   :  { %636 = vmatpush.msrb.mxu0 %v408_v2  ;;  %676 = vmatpush.msrb.mxu2 %v410_v4 }
  0x97   :  { %656 = vmatpush.msrb.mxu1 %v409_v3  ;;  %696 = vmatpush.msrb.mxu3 %v411_v5 }
  0x98   :  { %637 = vmatpush.msrb.mxu0 %v400_v6  ;;  %677 = vmatpush.msrb.mxu2 %v402_v8 }
  0x99   :  { %657 = vmatpush.msrb.mxu1 %v401_v7  ;;  %697 = vmatpush.msrb.mxu3 %v403_v9 }
  0xcb   :  { %v252_v11 = vpop.f32.mrf.mxu0 }
  0xcc   :  { %v253_v12 = vadd.f32 %v765_v10, %v252_v11 }
  0xce   :  { %v272_v13 = vpop.f32.mrf.mxu1 }
  0xcf   :  { %v273_v14 = vadd.f32 %v272_v13, %v253_v12  ;;  %v292_v15 = vpop.f32.mrf.mxu2 }
  0xd1   :  { %v293_v16 = vadd.f32 %v292_v15, %v273_v14 }
  0xd2   :  { %v312_v17 = vpop.f32.mrf.mxu3 }
  0xd3   :  { %v313_v18 = vadd.f32 %v312_v17, %v293_v16 }
  0xd5   :  { %v332_v19 = vpop.f32.mrf.mxu0 }
  0xd6   :  { %v333_v20 = vadd.f32 %v332_v19, %v313_v18 }
  0xd7   :  { %v352_v21 = vpop.f32.mrf.mxu1 }
  0xd8   :  { %v353_v22 = vadd.f32 %v352_v21, %v333_v20 }
  0xd9   :  { %v372_v23 = vpop.f32.mrf.mxu2 }
  0xda   :  { %v373_v24 = vadd.f32 %v372_v23, %v353_v22 }
  0xdb   :  { %v392_v25 = vpop.f32.mrf.mxu3 }
  0xdc   :  { %v393_v26 = vadd.f32 %v392_v25, %v373_v24 }
  0xde   :  { %v395_v27 = vmax.f32 %v393_v26, 0.0 }
  0xe0   :  { %558 = vmatmul.f32.vlgmr.msra.gmra.mxu0 %v395_v27  ;;  %578 = vmatmul.f32.vlgmr.msra.gmra.mxu1 %v395_v27 }
  0xe1   :  { %598 = vmatmul.f32.vlgmr.msra.gmra.mxu2 %v395_v27  ;;  %618 = vmatmul.f32.vlgmr.msra.gmra.mxu3 %v395_v27 }
  0xe8   :  { %638 = vmatmul.f32.vlgmr.msrb.gmra.mxu0 %v395_v27  ;;  %658 = vmatmul.f32.vlgmr.msrb.gmra.mxu1 %v395_v27 }
  0xe9   :  { %678 = vmatmul.f32.vlgmr.msrb.gmra.mxu2 %v395_v27  ;;  %698 = vmatmul.f32.vlgmr.msrb.gmra.mxu3 %v395_v27 }
 0x15d   :  { %v579_v30 = vpop.f32.mrf.mxu1  ;;  %v559_v32 = vpop.f32.mrf.mxu0 }
 0x15e   :  { %v580_v31 = vadd.f32 %v579_v30, %v527_v29  ;;  %v560_v42 = vadd.f32 %v559_v32, %v526_v35 }
 0x160   :  { %766 = vtanh.f32 %v580_v31 }
 0x164   :  { %v599_v36 = vpop.f32.mrf.mxu2  ;;  %v619_v37 = vpop.f32.mrf.mxu3 }
 0x165   :  { %v600_v39 = vadd.f32 %v599_v36, %v528_v33  ;;  %v620_v40 = vadd.f32 %v619_v37, %v529_v34  ;;  %v659_v41 = vpop.f32.mrf.mxu1  ;;  %v639_v48 = vpop.f32.mrf.mxu0 }
 0x166   :  { %v660_v43 = vadd.f32 %v659_v41, %v531_v38  ;;  %v767_v46 = vpop.eup %766  ;;  %v640_v57 = vadd.f32 %v639_v48, %v530_v47 }
 0x167   :  { %768 = vtanh.f32 %v600_v39  ;;  %v718_v52 = vrot.slane %v767_v46, 6 }
 0x168   :  { %770 = vtanh.f32 %v620_v40 }
 0x169   :  { %772 = vtanh.f32 %v560_v42 }
 0x16a   :  { %774 = vtanh.f32 %v660_v43 }
 0x16c   :  { %v679_v49 = vpop.f32.mrf.mxu2  ;;  %v699_v50 = vpop.f32.mrf.mxu3 }
 0x16d   :  { %v769_v51 = vpop.eup %768  ;;  %v680_v53 = vadd.f32 %v679_v49, %v532_v44  ;;  %v700_v54 = vadd.f32 %v699_v50, %v533_v45 }
 0x16e   :  { %v771_v55 = vpop.eup %770  ;;  %v719_v56 = vrot.slane %v769_v51, 4 }
 0x16f   :  { %v720_v58 = vrot.slane %v771_v55, 2  ;;  %776 = vtanh.f32 %v680_v53  ;;  %v773_v59 = vpop.eup %772 }
 0x170   :  { %778 = vtanh.f32 %v700_v54  ;;  %v725_v60 = vsel %vm724_vm0, %v773_v59, %v718_v52  ;;  %v775_v62 = vpop.eup %774 }
 0x171   :  { %v727_v61 = vsel %vm726_vm1, %v719_v56, %v720_v58  ;;  %780 = vtanh.f32 %v640_v57  ;;  %v721_v1 = vrot.slane %v775_v62, 6 }
 0x172   :  { %v729_v63 = vsel %vm728_vm2, %v725_v60, %v727_v61 }
 0x173   :  { %735 = vst [vmem:[#allocation10] sm:$0xff] %v729_v63 }
 0x175   :  { %v777_v0 = vpop.eup %776 }
 0x176   :  { %v779_v2 = vpop.eup %778  ;;  %v722_v3 = vrot.slane %v777_v0, 4 }
 0x177   :  { %v723_v4 = vrot.slane %v779_v2, 2  ;;  %v781_v5 = vpop.eup %780 }
 0x178   :  { %v730_v6 = vsel %vm724_vm0, %v781_v5, %v721_v1 }
 0x179   :  { %v731_v7 = vsel %vm726_vm1, %v722_v3, %v723_v4 }
 0x17a   :  { %v732_v8 = vsel %vm728_vm2, %v730_v6, %v731_v7 }
 0x17b   :  { %736 = vst [vmem:[#allocation10 + $0x8] sm:$0xff] %v732_v8 }
 0x17c   :  { %747 = dma.vmem_to_hbm [thread:$0]  %s743_s15, 256, %s745_s18, [#allocation4]  }
 0x17d   :  { %908 = dma.done.wait [#allocation4], 256  }
 0x17e   :  { %909 = vsyncadd [#allocation4], 4294967040 }
 0x17f   :  { %752 = vsyncpa [#allocation3], 1 }
 0x180   :  { %753 = vsyncpa [#allocation6], 1 }
 0x181   :  { %754 = vsyncpa [#allocation9], 1 }
 0x182   :  { %755 = vsyncpa [#allocation4], 1 }

// kernel: tpu_custom_call.1
= control target key start
LH: loop header
LB: loop body
LE: loop exit
PB: predicated region body
PF: predicated region fallthrough
CT: control target
= control target key end

     0   :  { %10 = vsyncpa [#allocation3], 0  ;;  %s973_s0 = inlined_call_operand.hbm [shape: f32[2,1024], index: 0, kind: input, shape index: {}]   ;;  %s974_s1 = inlined_call_operand.hbm [shape: f32[1024,128], index: 1, kind: input, shape index: {}]   ;;  %s975_s2 = inlined_call_operand.vmem [shape: f32[1,128], index: 2, kind: input, shape index: {}]   ;;  %s976_s3 = inlined_call_operand.hbm [shape: f32[128,1024], index: 3, kind: input, shape index: {}]   ;;  %s977_s4 = inlined_call_operand.hbm [shape: f32[1,1024], index: 4, kind: input, shape index: {}]   ;;  %s978_s5 = inlined_call_operand.hbm [shape: f32[2,1024], index: 5, kind: output, shape index: {}]  }
   0x1   :  { %11 = vsyncpa [#allocation6], 0 }
   0x2   :  { %12 = vsyncpa [#allocation9], 0  ;;  %s29_s20 = sshll.u32 %s974_s1, 4  ;;  %s30_s20 = int_to_ptr.hbm [resolvable:$true] %s29_s20 }
   0x3   :  { %13 = vsyncpa [#allocation4], 0  ;;  %s910_s21 = smov [#allocation5]   ;;  %s19_s25 = sshll.u32 %s973_s0, 4  ;;  %s20_s25 = int_to_ptr.hbm [resolvable:$true] %s19_s25 }
   0x4   :  { %s31_s22 = sshll.u32 %s910_s21, 4  ;;  %s911_s26 = smov 128   ;;  %s32_s22 = int_to_ptr.vmem [resolvable:$true] %s31_s22 }
   0x5   :  { %s912_s27 = smov 8   ;;  %s913_s28 = smov [#allocation2]  }
   0x6   :  { %37 = dma.hbm_to_vmem [thread:$0]  %s30_s20, 16384, %s32_s22, [#allocation6], %s911_s26, %s911_s26, %s912_s27  }
   0x7   :  { %s21_s29 = sshll.u32 %s913_s28, 4  ;;  %s44_s7 = sshll.u32 %s976_s3, 4  ;;  %s22_s29 = int_to_ptr.vmem [resolvable:$true] %s21_s29  ;;  %s45_s7 = int_to_ptr.hbm [resolvable:$true] %s44_s7 }
   0x8   :  { %24 = dma.hbm_to_vmem [thread:$0]  %s20_s25, 256, %s22_s29, [#allocation3]  }
   0x9   :  { %s914_s1 = smov [#allocation7]   ;;  %s58_s0 = sshll.u32 %s977_s4, 4  ;;  %s59_s0 = int_to_ptr.hbm [resolvable:$true] %s58_s0 }
   0xa   :  { %s46_s8 = sshll.u32 %s914_s1, 4  ;;  %s915_s11 = smov 1024   ;;  %s47_s8 = int_to_ptr.vmem [resolvable:$true] %s46_s8 }
   0xb   :  { %s916_s12 = smov 64   ;;  %s917_s13 = smov [#allocation8]  }
   0xc   :  { %52 = dma.hbm_to_vmem [thread:$0]  %s45_s7, 16384, %s47_s8, [#allocation6], %s915_s11, %s915_s11, %s916_s12  }
   0xd   :  { %s60_s14 = sshll.u32 %s917_s13, 4  ;;  %s61_s14 = int_to_ptr.vmem [resolvable:$true] %s60_s14 }
   0xe   :  { %63 = dma.hbm_to_vmem [thread:$0]  %s59_s0, 128, %s61_s14, [#allocation9]  }
   0xf   :  { %902 = dma.done.wait [#allocation3], 256  }
  0x10   :  { %903 = vsyncadd [#allocation3], 4294967040 }
  0x11   :  { %904 = dma.done.wait [#allocation6], 32768  }
  0x12   :  { %905 = vsyncadd [#allocation6], 4294934528 }
  0x13   :  { %906 = dma.done.wait [#allocation9], 128  }
  0x14   :  { %907 = vsyncadd [#allocation9], 4294967168  ;;  %v129_v0 = vld [vmem:[#allocation5 + $0x178] sm:$0xff]  ;;  %v128_v2 = vld [vmem:[#allocation5 + $0x170] sm:$0xff]  ;;  %vm724_vm0 = vcmask 1041408   ;;  %vm726_vm1 = vcmask 1045508  }
  0x15   :  { %v97_v1 = vld [vmem:[#allocation5 + $0x78] sm:$0xff]  ;;  %275 = vmatpush.msra.mxu2 %v129_v0  ;;  %v96_v4 = vld [vmem:[#allocation5 + $0x70] sm:$0xff]  ;;  %v127_v6 = vld [vmem:[#allocation5 + $0x168] sm:$0xff]  ;;  %vm728_vm2 = vcmask 1043456   ;;  %s744_s18 = sshll.u32 %s978_s5, 4  ;;  %s745_s18 = int_to_ptr.hbm [resolvable:$true] %s744_s18 }
  0x16   :  { %235 = vmatpush.msra.mxu0 %v97_v1  ;;  %v145_v3 = vld [vmem:[#allocation5 + $0x1f8] sm:$0xff]  ;;  %v144_v7 = vld [vmem:[#allocation5 + $0x1f0] sm:$0xff]  ;;  %v95_v8 = vld [vmem:[#allocation5 + $0x68] sm:$0xff] }
  0x17   :  { %v113_v5 = vld [vmem:[#allocation5 + $0xf8] sm:$0xff]  ;;  %295 = vmatpush.msra.mxu3 %v145_v3  ;;  %276 = vmatpush.msra.mxu2 %v128_v2  ;;  %v112_v9 = vld [vmem:[#allocation5 + $0xf0] sm:$0xff]  ;;  %v143_v10 = vld [vmem:[#allocation5 + $0x1e8] sm:$0xff] }
  0x18   :  { %255 = vmatpush.msra.mxu1 %v113_v5  ;;  %236 = vmatpush.msra.mxu0 %v96_v4  ;;  %v126_v11 = vld [vmem:[#allocation5 + $0x160] sm:$0xff]  ;;  %v111_v13 = vld [vmem:[#allocation5 + $0xe8] sm:$0xff]  ;;  %v125_v16 = vld [vmem:[#allocation5 + $0x158] sm:$0xff] }
  0x19   :  { %296 = vmatpush.msra.mxu3 %v144_v7  ;;  %v94_v12 = vld [vmem:[#allocation5 + $0x60] sm:$0xff]  ;;  %277 = vmatpush.msra.mxu2 %v127_v6  ;;  %v93_v17 = vld [vmem:[#allocation5 + $0x58] sm:$0xff]  ;;  %v124_v20 = vld [vmem:[#allocation5 + $0x150] sm:$0xff] }
  0x1a   :  { %256 = vmatpush.msra.mxu1 %v112_v9  ;;  %237 = vmatpush.msra.mxu0 %v95_v8  ;;  %v142_v14 = vld [vmem:[#allocation5 + $0x1e0] sm:$0xff]  ;;  %v141_v18 = vld [vmem:[#allocation5 + $0x1d8] sm:$0xff]  ;;  %v92_v21 = vld [vmem:[#allocation5 + $0x50] sm:$0xff] }
  0x1b   :  { %v110_v15 = vld [vmem:[#allocation5 + $0xe0] sm:$0xff]  ;;  %297 = vmatpush.msra.mxu3 %v143_v10  ;;  %278 = vmatpush.msra.mxu2 %v126_v11  ;;  %v109_v19 = vld [vmem:[#allocation5 + $0xd8] sm:$0xff]  ;;  %v140_v22 = vld [vmem:[#allocation5 + $0x1d0] sm:$0xff] }
  0x1c   :  { %257 = vmatpush.msra.mxu1 %v111_v13  ;;  %238 = vmatpush.msra.mxu0 %v94_v12  ;;  %v108_v23 = vld [vmem:[#allocation5 + $0xd0] sm:$0xff]  ;;  %v123_v24 = vld [vmem:[#allocation5 + $0x148] sm:$0xff]  ;;  %v122_v28 = vld [vmem:[#allocation5 + $0x140] sm:$0xff] }
  0x1d   :  { %298 = vmatpush.msra.mxu3 %v142_v14  ;;  %279 = vmatpush.msra.mxu2 %v125_v16  ;;  %v91_v25 = vld [vmem:[#allocation5 + $0x48] sm:$0xff]  ;;  %v90_v29 = vld [vmem:[#allocation5 + $0x40] sm:$0xff]  ;;  %v121_v32 = vld [vmem:[#allocation5 + $0x138] sm:$0xff] }
  0x1e   :  { %258 = vmatpush.msra.mxu1 %v110_v15  ;;  %239 = vmatpush.msra.mxu0 %v93_v17  ;;  %v139_v26 = vld [vmem:[#allocation5 + $0x1c8] sm:$0xff]  ;;  %v138_v30 = vld [vmem:[#allocation5 + $0x1c0] sm:$0xff]  ;;  %v89_v33 = vld [vmem:[#allocation5 + $0x38] sm:$0xff] }
  0x1f   :  { %299 = vmatpush.msra.mxu3 %v141_v18  ;;  %280 = vmatpush.msra.mxu2 %v124_v20  ;;  %v107_v27 = vld [vmem:[#allocation5 + $0xc8] sm:$0xff]  ;;  %v106_v31 = vld [vmem:[#allocation5 + $0xc0] sm:$0xff]  ;;  %v137_v34 = vld [vmem:[#allocation5 + $0x1b8] sm:$0xff] }
  0x20   :  { %259 = vmatpush.msra.mxu1 %v109_v19  ;;  %240 = vmatpush.msra.mxu0 %v92_v21  ;;  %v105_v35 = vld [vmem:[#allocation5 + $0xb8] sm:$0xff]  ;;  %v120_v36 = vld [vmem:[#allocation5 + $0x130] sm:$0xff]  ;;  %v119_v40 = vld [vmem:[#allocation5 + $0x128] sm:$0xff] }
  0x21   :  { %300 = vmatpush.msra.mxu3 %v140_v22  ;;  %281 = vmatpush.msra.mxu2 %v123_v24  ;;  %v88_v37 = vld [vmem:[#allocation5 + $0x30] sm:$0xff]  ;;  %v87_v41 = vld [vmem:[#allocation5 + $0x28] sm:$0xff]  ;;  %v118_v44 = vld [vmem:[#allocation5 + $0x120] sm:$0xff] }
  0x22   :  { %260 = vmatpush.msra.mxu1 %v108_v23  ;;  %241 = vmatpush.msra.mxu0 %v91_v25  ;;  %v136_v38 = vld [vmem:[#allocation5 + $0x1b0] sm:$0xff]  ;;  %v135_v42 = vld [vmem:[#allocation5 + $0x1a8] sm:$0xff]  ;;  %v86_v45 = vld [vmem:[#allocation5 + $0x20] sm:$0xff] }
  0x23   :  { %301 = vmatpush.msra.mxu3 %v139_v26  ;;  %282 = vmatpush.msra.mxu2 %v122_v28  ;;  %v104_v39 = vld [vmem:[#allocation5 + $0xb0] sm:$0xff]  ;;  %v103_v43 = vld [vmem:[#allocation5 + $0xa8] sm:$0xff]  ;;  %v134_v46 = vld [vmem:[#allocation5 + $0x1a0] sm:$0xff] }
  0x24   :  { %261 = vmatpush.msra.mxu1 %v107_v27  ;;  %242 = vmatpush.msra.mxu0 %v90_v29  ;;  %v102_v47 = vld [vmem:[#allocation5 + $0xa0] sm:$0xff]  ;;  %v117_v48 = vld [vmem:[#allocation5 + $0x118] sm:$0xff]  ;;  %v116_v52 = vld [vmem:[#allocation5 + $0x110] sm:$0xff] }
  0x25   :  { %302 = vmatpush.msra.mxu3 %v138_v30  ;;  %283 = vmatpush.msra.mxu2 %v121_v32  ;;  %v85_v49 = vld [vmem:[#allocation5 + $0x18] sm:$0xff]  ;;  %v84_v53 = vld [vmem:[#allocation5 + $0x10] sm:$0xff]  ;;  %v115_v56 = vld [vmem:[#allocation5 + $0x108] sm:$0xff] }
  0x26   :  { %262 = vmatpush.msra.mxu1 %v106_v31  ;;  %243 = vmatpush.msra.mxu0 %v89_v33  ;;  %v133_v50 = vld [vmem:[#allocation5 + $0x198] sm:$0xff]  ;;  %v132_v54 = vld [vmem:[#allocation5 + $0x190] sm:$0xff]  ;;  %v83_v57 = vld [vmem:[#allocation5 + $0x8] sm:$0xff] }
  0x27   :  { %303 = vmatpush.msra.mxu3 %v137_v34  ;;  %284 = vmatpush.msra.mxu2 %v120_v36  ;;  %v101_v51 = vld [vmem:[#allocation5 + $0x98] sm:$0xff]  ;;  %v100_v55 = vld [vmem:[#allocation5 + $0x90] sm:$0xff]  ;;  %v131_v58 = vld [vmem:[#allocation5 + $0x188] sm:$0xff] }
  0x28   :  { %263 = vmatpush.msra.mxu1 %v105_v35  ;;  %244 = vmatpush.msra.mxu0 %v88_v37  ;;  %v99_v59 = vld [vmem:[#allocation5 + $0x88] sm:$0xff]  ;;  %v114_v60 = vld [vmem:[#allocation5 + $0x100] sm:$0xff]  ;;  %v193_v62 = vld [vmem:[#allocation5 + $0x378] sm:$0xff] }
  0x29   :  { %304 = vmatpush.msra.mxu3 %v136_v38  ;;  %285 = vmatpush.msra.mxu2 %v119_v40  ;;  %v82_v61 = vld [vmem:[#allocation5] sm:$0xff]  ;;  %v161_v0 = vld [vmem:[#allocation5 + $0x278] sm:$0xff]  ;;  %v192_v2 = vld [vmem:[#allocation5 + $0x370] sm:$0xff] }
  0x2a   :  { %264 = vmatpush.msra.mxu1 %v104_v39  ;;  %245 = vmatpush.msra.mxu0 %v87_v41  ;;  %v130_v63 = vld [vmem:[#allocation5 + $0x180] sm:$0xff]  ;;  %v209_v1 = vld [vmem:[#allocation5 + $0x3f8] sm:$0xff]  ;;  %v160_v4 = vld [vmem:[#allocation5 + $0x270] sm:$0xff] }
  0x2b   :  { %305 = vmatpush.msra.mxu3 %v135_v42  ;;  %286 = vmatpush.msra.mxu2 %v118_v44  ;;  %v98_v3 = vld [vmem:[#allocation5 + $0x80] sm:$0xff]  ;;  %v177_v5 = vld [vmem:[#allocation5 + $0x2f8] sm:$0xff]  ;;  %v191_v6 = vld [vmem:[#allocation5 + $0x368] sm:$0xff] }
  0x2c   :  { %265 = vmatpush.msra.mxu1 %v103_v43  ;;  %246 = vmatpush.msra.mxu0 %v86_v45  ;;  %v208_v7 = vld [vmem:[#allocation5 + $0x3f0] sm:$0xff]  ;;  %v159_v8 = vld [vmem:[#allocation5 + $0x268] sm:$0xff]  ;;  %v190_v10 = vld [vmem:[#allocation5 + $0x360] sm:$0xff] }
  0x2d   :  { %306 = vmatpush.msra.mxu3 %v134_v46  ;;  %287 = vmatpush.msra.mxu2 %v117_v48  ;;  %v176_v9 = vld [vmem:[#allocation5 + $0x2f0] sm:$0xff]  ;;  %v207_v11 = vld [vmem:[#allocation5 + $0x3e8] sm:$0xff]  ;;  %v158_v12 = vld [vmem:[#allocation5 + $0x260] sm:$0xff] }
  0x2e   :  { %266 = vmatpush.msra.mxu1 %v102_v47  ;;  %247 = vmatpush.msra.mxu0 %v85_v49  ;;  %v175_v13 = vld [vmem:[#allocation5 + $0x2e8] sm:$0xff]  ;;  %v80_v14 = vld [vmem:[#allocation2] sm:$0xff]  ;;  %v189_v15 = vld [vmem:[#allocation5 + $0x358] sm:$0xff] }
  0x2f   :  { %307 = vmatpush.msra.mxu3 %v133_v50  ;;  %288 = vmatpush.msra.mxu2 %v116_v52  ;;  %v206_v16 = vld [vmem:[#allocation5 + $0x3e0] sm:$0xff]  ;;  %216 = vst [vmem:[#allocation1] ss:$4 sm:$0xff] %v80_v14  ;;  %v157_v17 = vld [vmem:[#allocation5 + $0x258] sm:$0xff]  ;;  %v188_v19 = vld [vmem:[#allocation5 + $0x350] sm:$0xff] }
  0x30   :  { %267 = vmatpush.msra.mxu1 %v101_v51  ;;  %248 = vmatpush.msra.mxu0 %v84_v53  ;;  %v174_v18 = vld [vmem:[#allocation5 + $0x2e0] sm:$0xff]  ;;  %v205_v20 = vld [vmem:[#allocation5 + $0x3d8] sm:$0xff]  ;;  %v156_v21 = vld [vmem:[#allocation5 + $0x250] sm:$0xff] }
  0x31   :  { %308 = vmatpush.msra.mxu3 %v132_v54  ;;  %289 = vmatpush.msra.mxu2 %v115_v56  ;;  %v173_v22 = vld [vmem:[#allocation5 + $0x2d8] sm:$0xff]  ;;  %v187_v23 = vld [vmem:[#allocation5 + $0x348] sm:$0xff]  ;;  %v204_v24 = vld [vmem:[#allocation5 + $0x3d0] sm:$0xff] }
  0x32   :  { %268 = vmatpush.msra.mxu1 %v100_v55  ;;  %249 = vmatpush.msra.mxu0 %v83_v57  ;;  %v81_v25 = vld [vmem:[#allocation2 + $0x8] sm:$0xff]  ;;  %v155_v26 = vld [vmem:[#allocation5 + $0x248] sm:$0xff]  ;;  %v172_v27 = vld [vmem:[#allocation5 + $0x2d0] sm:$0xff] }
  0x33   :  { %309 = vmatpush.msra.mxu3 %v131_v58  ;;  %290 = vmatpush.msra.mxu2 %v114_v60  ;;  %218 = vst [vmem:[#allocation1 + $0x20] ss:$4 sm:$0xff] %v81_v25  ;;  %v186_v28 = vld [vmem:[#allocation5 + $0x340] sm:$0xff]  ;;  %v203_v29 = vld [vmem:[#allocation5 + $0x3c8] sm:$0xff]  ;;  %v185_v32 = vld [vmem:[#allocation5 + $0x338] sm:$0xff] }
  0x34   :  { %269 = vmatpush.msra.mxu1 %v99_v59  ;;  %250 = vmatpush.msra.mxu0 %v82_v61  ;;  %v154_v30 = vld [vmem:[#allocation5 + $0x240] sm:$0xff]  ;;  %v171_v31 = vld [vmem:[#allocation5 + $0x2c8] sm:$0xff]  ;;  %v153_v34 = vld [vmem:[#allocation5 + $0x238] sm:$0xff] }
  0x35   :  { %355 = vmatpush.msrb.mxu2 %v193_v62  ;;  %310 = vmatpush.msra.mxu3 %v130_v63  ;;  %v202_v33 = vld [vmem:[#allocation5 + $0x3c0] sm:$0xff]  ;;  %v184_v36 = vld [vmem:[#allocation5 + $0x330] sm:$0xff]  ;;  %v201_v37 = vld [vmem:[#allocation5 + $0x3b8] sm:$0xff] }
  0x36   :  { %315 = vmatpush.msrb.mxu0 %v161_v0  ;;  %270 = vmatpush.msra.mxu1 %v98_v3  ;;  %v170_v35 = vld [vmem:[#allocation5 + $0x2c0] sm:$0xff]  ;;  %v152_v38 = vld [vmem:[#allocation5 + $0x230] sm:$0xff]  ;;  %v169_v39 = vld [vmem:[#allocation5 + $0x2b8] sm:$0xff] }
  0x37   :  { %375 = vmatpush.msrb.mxu3 %v209_v1  ;;  %356 = vmatpush.msrb.mxu2 %v192_v2  ;;  %v183_v40 = vld [vmem:[#allocation5 + $0x328] sm:$0xff]  ;;  %v200_v41 = vld [vmem:[#allocation5 + $0x3b0] sm:$0xff]  ;;  %v182_v44 = vld [vmem:[#allocation5 + $0x320] sm:$0xff] }
  0x38   :  { %316 = vmatpush.msrb.mxu0 %v160_v4  ;;  %335 = vmatpush.msrb.mxu1 %v177_v5  ;;  %v151_v42 = vld [vmem:[#allocation5 + $0x228] sm:$0xff]  ;;  %v168_v43 = vld [vmem:[#allocation5 + $0x2b0] sm:$0xff]  ;;  %v221_v46 = vld.sshfl [vmem:[#allocation1 + $0x10] sm:$0xff pattern:$0x73625140] }
  0x39   :  { %357 = vmatpush.msrb.mxu2 %v191_v6  ;;  %376 = vmatpush.msrb.mxu3 %v208_v7  ;;  %v199_v45 = vld [vmem:[#allocation5 + $0x3a8] sm:$0xff]  ;;  %v150_v47 = vld [vmem:[#allocation5 + $0x220] sm:$0xff]  ;;  %v181_v49 = vld [vmem:[#allocation5 + $0x318] sm:$0xff] }
  0x3a   :  { %317 = vmatpush.msrb.mxu0 %v159_v8  ;;  %336 = vmatpush.msrb.mxu1 %v176_v9  ;;  %v167_v48 = vld [vmem:[#allocation5 + $0x2a8] sm:$0xff]  ;;  %v198_v50 = vld [vmem:[#allocation5 + $0x3a0] sm:$0xff]  ;;  %v149_v53 = vld [vmem:[#allocation5 + $0x218] sm:$0xff] }
  0x3b   :  { %358 = vmatpush.msrb.mxu2 %v190_v10  ;;  %377 = vmatpush.msrb.mxu3 %v207_v11  ;;  %v219_v51 = vld.sshfl [vmem:[#allocation1] sm:$0xff pattern:$0x73625140]  ;;  %v222_v52 = vld.sshfl [vmem:[#allocation1 + $0x18] sm:$0xff pattern:$0x73625140] }
  0x3c   :  { %318 = vmatpush.msrb.mxu0 %v158_v12  ;;  %337 = vmatpush.msrb.mxu1 %v175_v13  ;;  %v166_v54 = vld [vmem:[#allocation5 + $0x2a0] sm:$0xff]  ;;  %v180_v55 = vld [vmem:[#allocation5 + $0x310] sm:$0xff]  ;;  %v197_v56 = vld [vmem:[#allocation5 + $0x398] sm:$0xff] }
  0x3d   :  { %359 = vmatpush.msrb.mxu2 %v189_v15  ;;  %378 = vmatpush.msrb.mxu3 %v206_v16  ;;  %v220_v57 = vld.sshfl [vmem:[#allocation1 + $0x8] sm:$0xff pattern:$0x73625140]  ;;  %v165_v59 = vld [vmem:[#allocation5 + $0x298] sm:$0xff]  ;;  %v179_v60 = vld [vmem:[#allocation5 + $0x308] sm:$0xff] }
  0x3e   :  { %319 = vmatpush.msrb.mxu0 %v157_v17  ;;  %338 = vmatpush.msrb.mxu1 %v174_v18  ;;  %v148_v58 = vld [vmem:[#allocation5 + $0x210] sm:$0xff]  ;;  %v147_v62 = vld [vmem:[#allocation5 + $0x208] sm:$0xff]  ;;  %v178_v0 = vld [vmem:[#allocation5 + $0x300] sm:$0xff] }
  0x3f   :  { %360 = vmatpush.msrb.mxu2 %v188_v19  ;;  %379 = vmatpush.msrb.mxu3 %v205_v20  ;;  %v196_v61 = vld [vmem:[#allocation5 + $0x390] sm:$0xff]  ;;  %v195_v1 = vld [vmem:[#allocation5 + $0x388] sm:$0xff]  ;;  %v225_v2 = vld.sshfl [vmem:[#allocation1 + $0x30] sm:$0xff pattern:$0x73625140] }
  0x40   :  { %320 = vmatpush.msrb.mxu0 %v156_v21  ;;  %339 = vmatpush.msrb.mxu1 %v173_v22  ;;  %v164_v63 = vld [vmem:[#allocation5 + $0x290] sm:$0xff]  ;;  %v146_v3 = vld [vmem:[#allocation5 + $0x200] sm:$0xff]  ;;  %v163_v4 = vld [vmem:[#allocation5 + $0x288] sm:$0xff] }
  0x41   :  { %361 = vmatpush.msrb.mxu2 %v187_v23  ;;  %380 = vmatpush.msrb.mxu3 %v204_v24  ;;  %v194_v5 = vld [vmem:[#allocation5 + $0x380] sm:$0xff]  ;;  %v223_v6 = vld.sshfl [vmem:[#allocation1 + $0x20] sm:$0xff pattern:$0x73625140]  ;;  %v518_v11 = vld [vmem:[#allocation7 + $0x3d0] sm:$0xff] }
  0x42   :  { %321 = vmatpush.msrb.mxu0 %v155_v26  ;;  %340 = vmatpush.msrb.mxu1 %v172_v27  ;;  %v226_v7 = vld.sshfl [vmem:[#allocation1 + $0x38] sm:$0xff pattern:$0x73625140]  ;;  %v224_v10 = vld.sshfl [vmem:[#allocation1 + $0x28] sm:$0xff pattern:$0x73625140] }
  0x43   :  { %362 = vmatpush.msrb.mxu2 %v186_v28  ;;  %381 = vmatpush.msrb.mxu3 %v203_v29  ;;  %v162_v8 = vld [vmem:[#allocation5 + $0x280] sm:$0xff]  ;;  %v517_v12 = vld [vmem:[#allocation7 + $0x3c8] sm:$0xff]  ;;  %v519_v13 = vld [vmem:[#allocation7 + $0x3d8] sm:$0xff] }
  0x44   :  { %322 = vmatpush.msrb.mxu0 %v154_v30  ;;  %341 = vmatpush.msrb.mxu1 %v171_v31  ;;  %v516_v9 = vld [vmem:[#allocation7 + $0x3c0] sm:$0xff]  ;;  %v510_v15 = vld [vmem:[#allocation7 + $0x390] sm:$0xff]  ;;  %v509_v16 = vld [vmem:[#allocation7 + $0x388] sm:$0xff] }
  0x45   :  { %363 = vmatpush.msrb.mxu2 %v185_v32  ;;  %382 = vmatpush.msrb.mxu3 %v202_v33  ;;  %v508_v14 = vld [vmem:[#allocation7 + $0x380] sm:$0xff]  ;;  %v511_v17 = vld [vmem:[#allocation7 + $0x398] sm:$0xff]  ;;  %v502_v19 = vld [vmem:[#allocation7 + $0x350] sm:$0xff] }
  0x46   :  { %323 = vmatpush.msrb.mxu0 %v153_v34  ;;  %342 = vmatpush.msrb.mxu1 %v170_v35  ;;  %v500_v18 = vld [vmem:[#allocation7 + $0x340] sm:$0xff]  ;;  %v501_v20 = vld [vmem:[#allocation7 + $0x348] sm:$0xff]  ;;  %v503_v21 = vld [vmem:[#allocation7 + $0x358] sm:$0xff] }
  0x47   :  { %364 = vmatpush.msrb.mxu2 %v184_v36  ;;  %383 = vmatpush.msrb.mxu3 %v201_v37  ;;  %v492_v22 = vld [vmem:[#allocation7 + $0x300] sm:$0xff]  ;;  %v494_v23 = vld [vmem:[#allocation7 + $0x310] sm:$0xff]  ;;  %v493_v24 = vld [vmem:[#allocation7 + $0x308] sm:$0xff] }
  0x48   :  { %324 = vmatpush.msrb.mxu0 %v152_v38  ;;  %343 = vmatpush.msrb.mxu1 %v169_v39  ;;  %v495_v25 = vld [vmem:[#allocation7 + $0x318] sm:$0xff]  ;;  %v484_v26 = vld [vmem:[#allocation7 + $0x2c0] sm:$0xff]  ;;  %v486_v27 = vld [vmem:[#allocation7 + $0x2d0] sm:$0xff] }
  0x49   :  { %365 = vmatpush.msrb.mxu2 %v183_v40  ;;  %384 = vmatpush.msrb.mxu3 %v200_v41  ;;  %v485_v28 = vld [vmem:[#allocation7 + $0x2c8] sm:$0xff]  ;;  %v487_v29 = vld [vmem:[#allocation7 + $0x2d8] sm:$0xff]  ;;  %v476_v30 = vld [vmem:[#allocation7 + $0x280] sm:$0xff] }
  0x4a   :  { %325 = vmatpush.msrb.mxu0 %v151_v42  ;;  %344 = vmatpush.msrb.mxu1 %v168_v43  ;;  %v478_v31 = vld [vmem:[#allocation7 + $0x290] sm:$0xff]  ;;  %v477_v32 = vld [vmem:[#allocation7 + $0x288] sm:$0xff]  ;;  %v479_v33 = vld [vmem:[#allocation7 + $0x298] sm:$0xff] }
  0x4b   :  { %366 = vmatpush.msrb.mxu2 %v182_v44  ;;  %385 = vmatpush.msrb.mxu3 %v199_v45  ;;  %v468_v34 = vld [vmem:[#allocation7 + $0x240] sm:$0xff]  ;;  %v470_v35 = vld [vmem:[#allocation7 + $0x250] sm:$0xff]  ;;  %v469_v36 = vld [vmem:[#allocation7 + $0x248] sm:$0xff] }
  0x4c   :  { %291 = vmatmul.f32.vlgmr.msra.gmra.mxu2 %v221_v46  ;;  %326 = vmatpush.msrb.mxu0 %v150_v47  ;;  %v471_v37 = vld [vmem:[#allocation7 + $0x258] sm:$0xff]  ;;  %v460_v38 = vld [vmem:[#allocation7 + $0x200] sm:$0xff]  ;;  %v462_v39 = vld [vmem:[#allocation7 + $0x210] sm:$0xff] }
  0x4d   :  { %345 = vmatpush.msrb.mxu1 %v167_v48  ;;  %367 = vmatpush.msrb.mxu2 %v181_v49  ;;  %v461_v40 = vld [vmem:[#allocation7 + $0x208] sm:$0xff]  ;;  %v463_v41 = vld [vmem:[#allocation7 + $0x218] sm:$0xff]  ;;  %v452_v42 = vld [vmem:[#allocation7 + $0x1c0] sm:$0xff] }
  0x4e   :  { %386 = vmatpush.msrb.mxu3 %v198_v50  ;;  %251 = vmatmul.f32.vlgmr.msra.gmra.mxu0 %v219_v51  ;;  %v454_v43 = vld [vmem:[#allocation7 + $0x1d0] sm:$0xff]  ;;  %v453_v44 = vld [vmem:[#allocation7 + $0x1c8] sm:$0xff]  ;;  %v455_v45 = vld [vmem:[#allocation7 + $0x1d8] sm:$0xff] }
  0x4f   :  { %311 = vmatmul.f32.vlgmr.msra.gmra.mxu3 %v222_v52  ;;  %327 = vmatpush.msrb.mxu0 %v149_v53  ;;  %v444_v46 = vld [vmem:[#allocation7 + $0x180] sm:$0xff]  ;;  %v446_v47 = vld [vmem:[#allocation7 + $0x190] sm:$0xff]  ;;  %v445_v48 = vld [vmem:[#allocation7 + $0x188] sm:$0xff] }
  0x50   :  { %346 = vmatpush.msrb.mxu1 %v166_v54  ;;  %368 = vmatpush.msrb.mxu2 %v180_v55  ;;  %v447_v49 = vld [vmem:[#allocation7 + $0x198] sm:$0xff]  ;;  %v436_v50 = vld [vmem:[#allocation7 + $0x140] sm:$0xff]  ;;  %v438_v51 = vld [vmem:[#allocation7 + $0x150] sm:$0xff] }
  0x51   :  { %387 = vmatpush.msrb.mxu3 %v197_v56  ;;  %271 = vmatmul.f32.vlgmr.msra.gmra.mxu1 %v220_v57  ;;  %v437_v52 = vld [vmem:[#allocation7 + $0x148] sm:$0xff]  ;;  %v439_v53 = vld [vmem:[#allocation7 + $0x158] sm:$0xff]  ;;  %v428_v54 = vld [vmem:[#allocation7 + $0x100] sm:$0xff] }
  0x52   :  { %328 = vmatpush.msrb.mxu0 %v148_v58  ;;  %347 = vmatpush.msrb.mxu1 %v165_v59  ;;  %v430_v55 = vld [vmem:[#allocation7 + $0x110] sm:$0xff]  ;;  %v429_v56 = vld [vmem:[#allocation7 + $0x108] sm:$0xff]  ;;  %v431_v57 = vld [vmem:[#allocation7 + $0x118] sm:$0xff] }
  0x53   :  { %369 = vmatpush.msrb.mxu2 %v179_v60  ;;  %388 = vmatpush.msrb.mxu3 %v196_v61  ;;  %v420_v58 = vld [vmem:[#allocation7 + $0xc0] sm:$0xff]  ;;  %v422_v59 = vld [vmem:[#allocation7 + $0xd0] sm:$0xff]  ;;  %v421_v60 = vld [vmem:[#allocation7 + $0xc8] sm:$0xff] }
  0x54   :  { %329 = vmatpush.msrb.mxu0 %v147_v62  ;;  %348 = vmatpush.msrb.mxu1 %v164_v63  ;;  %v423_v61 = vld [vmem:[#allocation7 + $0xd8] sm:$0xff]  ;;  %v412_v62 = vld [vmem:[#allocation7 + $0x80] sm:$0xff]  ;;  %v414_v63 = vld [vmem:[#allocation7 + $0x90] sm:$0xff] }
  0x55   :  { %370 = vmatpush.msrb.mxu2 %v178_v0  ;;  %389 = vmatpush.msrb.mxu3 %v195_v1  ;;  %v413_v0 = vld [vmem:[#allocation7 + $0x88] sm:$0xff]  ;;  %v415_v1 = vld [vmem:[#allocation7 + $0x98] sm:$0xff] }
  0x56   :  { %371 = vmatmul.f32.vlgmr.msrb.gmra.mxu2 %v225_v2  ;;  %330 = vmatpush.msrb.mxu0 %v146_v3  ;;  %v404_v2 = vld [vmem:[#allocation7 + $0x40] sm:$0xff]  ;;  %v406_v3 = vld [vmem:[#allocation7 + $0x50] sm:$0xff] }
  0x57   :  { %349 = vmatpush.msrb.mxu1 %v163_v4  ;;  %390 = vmatpush.msrb.mxu3 %v194_v5  ;;  %v405_v4 = vld [vmem:[#allocation7 + $0x48] sm:$0xff]  ;;  %v407_v5 = vld [vmem:[#allocation7 + $0x58] sm:$0xff] }
  0x58   :  { %331 = vmatmul.f32.vlgmr.msrb.gmra.mxu0 %v223_v6  ;;  %391 = vmatmul.f32.vlgmr.msrb.gmra.mxu3 %v226_v7  ;;  %v396_v6 = vld [vmem:[#allocation7] sm:$0xff]  ;;  %v398_v7 = vld [vmem:[#allocation7 + $0x10] sm:$0xff] }
  0x59   :  { %350 = vmatpush.msrb.mxu1 %v162_v8  ;;  %542 = vmatpush.msra.mxu0 %v516_v9  ;;  %v397_v8 = vld [vmem:[#allocation7 + $0x8] sm:$0xff]  ;;  %v399_v9 = vld [vmem:[#allocation7 + $0x18] sm:$0xff] }
  0x5a   :  { %351 = vmatmul.f32.vlgmr.msrb.gmra.mxu1 %v224_v10  ;;  %582 = vmatpush.msra.mxu2 %v518_v11  ;;  %v520_v10 = vld [vmem:[#allocation7 + $0x3e0] sm:$0xff]  ;;  %v521_v11 = vld [vmem:[#allocation7 + $0x3e8] sm:$0xff] }
  0x5b   :  { %562 = vmatpush.msra.mxu1 %v517_v12  ;;  %602 = vmatpush.msra.mxu3 %v519_v13  ;;  %v522_v12 = vld [vmem:[#allocation7 + $0x3f0] sm:$0xff]  ;;  %v523_v13 = vld [vmem:[#allocation7 + $0x3f8] sm:$0xff] }
  0x5c   :  { %543 = vmatpush.msra.mxu0 %v508_v14  ;;  %583 = vmatpush.msra.mxu2 %v510_v15  ;;  %v512_v14 = vld [vmem:[#allocation7 + $0x3a0] sm:$0xff]  ;;  %v513_v15 = vld [vmem:[#allocation7 + $0x3a8] sm:$0xff] }
  0x5d   :  { %563 = vmatpush.msra.mxu1 %v509_v16  ;;  %603 = vmatpush.msra.mxu3 %v511_v17  ;;  %v514_v16 = vld [vmem:[#allocation7 + $0x3b0] sm:$0xff]  ;;  %v515_v17 = vld [vmem:[#allocation7 + $0x3b8] sm:$0xff] }
  0x5e   :  { %544 = vmatpush.msra.mxu0 %v500_v18  ;;  %584 = vmatpush.msra.mxu2 %v502_v19  ;;  %v504_v18 = vld [vmem:[#allocation7 + $0x360] sm:$0xff]  ;;  %v505_v19 = vld [vmem:[#allocation7 + $0x368] sm:$0xff] }
  0x5f   :  { %564 = vmatpush.msra.mxu1 %v501_v20  ;;  %604 = vmatpush.msra.mxu3 %v503_v21  ;;  %v506_v20 = vld [vmem:[#allocation7 + $0x370] sm:$0xff]  ;;  %v507_v21 = vld [vmem:[#allocation7 + $0x378] sm:$0xff] }
  0x60   :  { %545 = vmatpush.msra.mxu0 %v492_v22  ;;  %585 = vmatpush.msra.mxu2 %v494_v23  ;;  %v496_v22 = vld [vmem:[#allocation7 + $0x320] sm:$0xff]  ;;  %v497_v23 = vld [vmem:[#allocation7 + $0x328] sm:$0xff] }
  0x61   :  { %565 = vmatpush.msra.mxu1 %v493_v24  ;;  %605 = vmatpush.msra.mxu3 %v495_v25  ;;  %v498_v24 = vld [vmem:[#allocation7 + $0x330] sm:$0xff]  ;;  %v499_v25 = vld [vmem:[#allocation7 + $0x338] sm:$0xff] }
  0x62   :  { %546 = vmatpush.msra.mxu0 %v484_v26  ;;  %586 = vmatpush.msra.mxu2 %v486_v27  ;;  %v488_v26 = vld [vmem:[#allocation7 + $0x2e0] sm:$0xff]  ;;  %v489_v27 = vld [vmem:[#allocation7 + $0x2e8] sm:$0xff] }
  0x63   :  { %566 = vmatpush.msra.mxu1 %v485_v28  ;;  %606 = vmatpush.msra.mxu3 %v487_v29  ;;  %v490_v28 = vld [vmem:[#allocation7 + $0x2f0] sm:$0xff]  ;;  %v491_v29 = vld [vmem:[#allocation7 + $0x2f8] sm:$0xff] }
  0x64   :  { %547 = vmatpush.msra.mxu0 %v476_v30  ;;  %587 = vmatpush.msra.mxu2 %v478_v31  ;;  %v480_v30 = vld [vmem:[#allocation7 + $0x2a0] sm:$0xff]  ;;  %v481_v31 = vld [vmem:[#allocation7 + $0x2a8] sm:$0xff] }
  0x65   :  { %567 = vmatpush.msra.mxu1 %v477_v32  ;;  %607 = vmatpush.msra.mxu3 %v479_v33  ;;  %v482_v32 = vld [vmem:[#allocation7 + $0x2b0] sm:$0xff]  ;;  %v483_v33 = vld [vmem:[#allocation7 + $0x2b8] sm:$0xff] }
  0x66   :  { %548 = vmatpush.msra.mxu0 %v468_v34  ;;  %588 = vmatpush.msra.mxu2 %v470_v35  ;;  %v472_v34 = vld [vmem:[#allocation7 + $0x260] sm:$0xff]  ;;  %v473_v35 = vld [vmem:[#allocation7 + $0x268] sm:$0xff] }
  0x67   :  { %568 = vmatpush.msra.mxu1 %v469_v36  ;;  %608 = vmatpush.msra.mxu3 %v471_v37  ;;  %v474_v36 = vld [vmem:[#allocation7 + $0x270] sm:$0xff]  ;;  %v475_v37 = vld [vmem:[#allocation7 + $0x278] sm:$0xff] }
  0x68   :  { %549 = vmatpush.msra.mxu0 %v460_v38  ;;  %589 = vmatpush.msra.mxu2 %v462_v39  ;;  %v464_v38 = vld [vmem:[#allocation7 + $0x220] sm:$0xff]  ;;  %v465_v39 = vld [vmem:[#allocation7 + $0x228] sm:$0xff] }
  0x69   :  { %569 = vmatpush.msra.mxu1 %v461_v40  ;;  %609 = vmatpush.msra.mxu3 %v463_v41  ;;  %v466_v40 = vld [vmem:[#allocation7 + $0x230] sm:$0xff]  ;;  %v467_v41 = vld [vmem:[#allocation7 + $0x238] sm:$0xff] }
  0x6a   :  { %550 = vmatpush.msra.mxu0 %v452_v42  ;;  %590 = vmatpush.msra.mxu2 %v454_v43  ;;  %v456_v42 = vld [vmem:[#allocation7 + $0x1e0] sm:$0xff]  ;;  %v457_v43 = vld [vmem:[#allocation7 + $0x1e8] sm:$0xff] }
  0x6b   :  { %570 = vmatpush.msra.mxu1 %v453_v44  ;;  %610 = vmatpush.msra.mxu3 %v455_v45  ;;  %v458_v44 = vld [vmem:[#allocation7 + $0x1f0] sm:$0xff]  ;;  %v459_v45 = vld [vmem:[#allocation7 + $0x1f8] sm:$0xff] }
  0x6c   :  { %551 = vmatpush.msra.mxu0 %v444_v46  ;;  %591 = vmatpush.msra.mxu2 %v446_v47  ;;  %v448_v46 = vld [vmem:[#allocation7 + $0x1a0] sm:$0xff]  ;;  %v449_v47 = vld [vmem:[#allocation7 + $0x1a8] sm:$0xff] }
  0x6d   :  { %571 = vmatpush.msra.mxu1 %v445_v48  ;;  %611 = vmatpush.msra.mxu3 %v447_v49  ;;  %v450_v48 = vld [vmem:[#allocation7 + $0x1b0] sm:$0xff]  ;;  %v451_v49 = vld [vmem:[#allocation7 + $0x1b8] sm:$0xff] }
  0x6e   :  { %552 = vmatpush.msra.mxu0 %v436_v50  ;;  %592 = vmatpush.msra.mxu2 %v438_v51  ;;  %v440_v50 = vld [vmem:[#allocation7 + $0x160] sm:$0xff]  ;;  %v441_v51 = vld [vmem:[#allocation7 + $0x168] sm:$0xff] }
  0x6f   :  { %572 = vmatpush.msra.mxu1 %v437_v52  ;;  %612 = vmatpush.msra.mxu3 %v439_v53  ;;  %v442_v52 = vld [vmem:[#allocation7 + $0x170] sm:$0xff]  ;;  %v443_v53 = vld [vmem:[#allocation7 + $0x178] sm:$0xff] }
  0x70   :  { %553 = vmatpush.msra.mxu0 %v428_v54  ;;  %593 = vmatpush.msra.mxu2 %v430_v55  ;;  %v432_v54 = vld [vmem:[#allocation7 + $0x120] sm:$0xff]  ;;  %v433_v55 = vld [vmem:[#allocation7 + $0x128] sm:$0xff] }
  0x71   :  { %573 = vmatpush.msra.mxu1 %v429_v56  ;;  %613 = vmatpush.msra.mxu3 %v431_v57  ;;  %v434_v56 = vld [vmem:[#allocation7 + $0x130] sm:$0xff]  ;;  %v435_v57 = vld [vmem:[#allocation7 + $0x138] sm:$0xff] }
  0x72   :  { %554 = vmatpush.msra.mxu0 %v420_v58  ;;  %594 = vmatpush.msra.mxu2 %v422_v59  ;;  %v424_v58 = vld [vmem:[#allocation7 + $0xe0] sm:$0xff]  ;;  %v425_v59 = vld [vmem:[#allocation7 + $0xe8] sm:$0xff] }
  0x73   :  { %574 = vmatpush.msra.mxu1 %v421_v60  ;;  %614 = vmatpush.msra.mxu3 %v423_v61  ;;  %v426_v60 = vld [vmem:[#allocation7 + $0xf0] sm:$0xff]  ;;  %v427_v61 = vld [vmem:[#allocation7 + $0xf8] sm:$0xff] }
  0x74   :  { %555 = vmatpush.msra.mxu0 %v412_v62  ;;  %595 = vmatpush.msra.mxu2 %v414_v63  ;;  %v416_v62 = vld [vmem:[#allocation7 + $0xa0] sm:$0xff]  ;;  %v417_v63 = vld [vmem:[#allocation7 + $0xa8] sm:$0xff] }
  0x75   :  { %575 = vmatpush.msra.mxu1 %v413_v0  ;;  %615 = vmatpush.msra.mxu3 %v415_v1  ;;  %v418_v0 = vld [vmem:[#allocation7 + $0xb0] sm:$0xff]  ;;  %v419_v1 = vld [vmem:[#allocation7 + $0xb8] sm:$0xff] }
  0x76   :  { %556 = vmatpush.msra.mxu0 %v404_v2  ;;  %596 = vmatpush.msra.mxu2 %v406_v3  ;;  %v408_v2 = vld [vmem:[#allocation7 + $0x60] sm:$0xff]  ;;  %v409_v3 = vld [vmem:[#allocation7 + $0x68] sm:$0xff] }
  0x77   :  { %576 = vmatpush.msra.mxu1 %v405_v4  ;;  %616 = vmatpush.msra.mxu3 %v407_v5  ;;  %v410_v4 = vld [vmem:[#allocation7 + $0x70] sm:$0xff]  ;;  %v411_v5 = vld [vmem:[#allocation7 + $0x78] sm:$0xff] }
  0x78   :  { %557 = vmatpush.msra.mxu0 %v396_v6  ;;  %597 = vmatpush.msra.mxu2 %v398_v7  ;;  %v400_v6 = vld [vmem:[#allocation7 + $0x20] sm:$0xff]  ;;  %v401_v7 = vld [vmem:[#allocation7 + $0x28] sm:$0xff] }
  0x79   :  { %577 = vmatpush.msra.mxu1 %v397_v8  ;;  %617 = vmatpush.msra.mxu3 %v399_v9  ;;  %v402_v8 = vld [vmem:[#allocation7 + $0x30] sm:$0xff]  ;;  %v403_v9 = vld [vmem:[#allocation7 + $0x38] sm:$0xff] }
  0x7a   :  { %622 = vmatpush.msrb.mxu0 %v520_v10  ;;  %662 = vmatpush.msrb.mxu2 %v522_v12  ;;  %v765_v10 = vld [vmem:[%s975_s2] ss:$0 sm:$0xff]  ;;  %s918_s2 = smov [#allocation10]  }
  0x7b   :  { %642 = vmatpush.msrb.mxu1 %v521_v11  ;;  %682 = vmatpush.msrb.mxu3 %v523_v13  ;;  %s742_s15 = sshll.u32 %s918_s2, 4  ;;  %s743_s15 = int_to_ptr.vmem [resolvable:$true] %s742_s15 }
  0x7c   :  { %623 = vmatpush.msrb.mxu0 %v512_v14  ;;  %663 = vmatpush.msrb.mxu2 %v514_v16 }
  0x7d   :  { %643 = vmatpush.msrb.mxu1 %v513_v15  ;;  %683 = vmatpush.msrb.mxu3 %v515_v17 }
  0x7e   :  { %624 = vmatpush.msrb.mxu0 %v504_v18  ;;  %664 = vmatpush.msrb.mxu2 %v506_v20 }
  0x7f   :  { %644 = vmatpush.msrb.mxu1 %v505_v19  ;;  %684 = vmatpush.msrb.mxu3 %v507_v21 }
  0x80   :  { %625 = vmatpush.msrb.mxu0 %v496_v22  ;;  %665 = vmatpush.msrb.mxu2 %v498_v24 }
  0x81   :  { %645 = vmatpush.msrb.mxu1 %v497_v23  ;;  %685 = vmatpush.msrb.mxu3 %v499_v25 }
  0x82   :  { %626 = vmatpush.msrb.mxu0 %v488_v26  ;;  %666 = vmatpush.msrb.mxu2 %v490_v28  ;;  %v524_v28 = vld [vmem:[#allocation8] sm:$0xff] }
  0x83   :  { %646 = vmatpush.msrb.mxu1 %v489_v27  ;;  %686 = vmatpush.msrb.mxu3 %v491_v29  ;;  %v527_v29 = vperm.slane %v524_v28, 1 }
  0x84   :  { %627 = vmatpush.msrb.mxu0 %v480_v30  ;;  %667 = vmatpush.msrb.mxu2 %v482_v32 }
  0x85   :  { %647 = vmatpush.msrb.mxu1 %v481_v31  ;;  %687 = vmatpush.msrb.mxu3 %v483_v33  ;;  %v528_v33 = vperm.slane %v524_v28, 2 }
  0x86   :  { %628 = vmatpush.msrb.mxu0 %v472_v34  ;;  %668 = vmatpush.msrb.mxu2 %v474_v36  ;;  %v529_v34 = vperm.slane %v524_v28, 3 }
  0x87   :  { %648 = vmatpush.msrb.mxu1 %v473_v35  ;;  %688 = vmatpush.msrb.mxu3 %v475_v37  ;;  %v526_v35 = vperm.slane %v524_v28, 0 }
  0x88   :  { %629 = vmatpush.msrb.mxu0 %v464_v38  ;;  %669 = vmatpush.msrb.mxu2 %v466_v40  ;;  %v531_v38 = vperm.slane %v524_v28, 5 }
  0x89   :  { %649 = vmatpush.msrb.mxu1 %v465_v39  ;;  %689 = vmatpush.msrb.mxu3 %v467_v41 }
  0x8a   :  { %630 = vmatpush.msrb.mxu0 %v456_v42  ;;  %670 = vmatpush.msrb.mxu2 %v458_v44  ;;  %v532_v44 = vperm.slane %v524_v28, 6 }
  0x8b   :  { %650 = vmatpush.msrb.mxu1 %v457_v43  ;;  %690 = vmatpush.msrb.mxu3 %v459_v45  ;;  %v533_v45 = vperm.slane %v524_v28, 7 }
  0x8c   :  { %631 = vmatpush.msrb.mxu0 %v448_v46  ;;  %671 = vmatpush.msrb.mxu2 %v450_v48 }
  0x8d   :  { %651 = vmatpush.msrb.mxu1 %v449_v47  ;;  %691 = vmatpush.msrb.mxu3 %v451_v49  ;;  %v530_v47 = vperm.slane %v524_v28, 4 }
  0x8e   :  { %632 = vmatpush.msrb.mxu0 %v440_v50  ;;  %672 = vmatpush.msrb.mxu2 %v442_v52 }
  0x8f   :  { %652 = vmatpush.msrb.mxu1 %v441_v51  ;;  %692 = vmatpush.msrb.mxu3 %v443_v53 }
  0x90   :  { %633 = vmatpush.msrb.mxu0 %v432_v54  ;;  %673 = vmatpush.msrb.mxu2 %v434_v56 }
  0x91   :  { %653 = vmatpush.msrb.mxu1 %v433_v55  ;;  %693 = vmatpush.msrb.mxu3 %v435_v57 }
  0x92   :  { %634 = vmatpush.msrb.mxu0 %v424_v58  ;;  %674 = vmatpush.msrb.mxu2 %v426_v60 }
  0x93   :  { %654 = vmatpush.msrb.mxu1 %v425_v59  ;;  %694 = vmatpush.msrb.mxu3 %v427_v61 }
  0x94   :  { %635 = vmatpush.msrb.mxu0 %v416_v62  ;;  %675 = vmatpush.msrb.mxu2 %v418_v0 }
  0x95   :  { %655 = vmatpush.msrb.mxu1 %v417_v63  ;;  %695 = vmatpush.msrb.mxu3 %v419_v1 }
  0x96   :  { %636 = vmatpush.msrb.mxu0 %v408_v2  ;;  %676 = vmatpush.msrb.mxu2 %v410_v4 }
  0x97   :  { %656 = vmatpush.msrb.mxu1 %v409_v3  ;;  %696 = vmatpush.msrb.mxu3 %v411_v5 }
  0x98   :  { %637 = vmatpush.msrb.mxu0 %v400_v6  ;;  %677 = vmatpush.msrb.mxu2 %v402_v8 }
  0x99   :  { %657 = vmatpush.msrb.mxu1 %v401_v7  ;;  %697 = vmatpush.msrb.mxu3 %v403_v9 }
  0xcb   :  { %v252_v11 = vpop.f32.mrf.mxu0 }
  0xcc   :  { %v253_v12 = vadd.f32 %v765_v10, %v252_v11 }
  0xce   :  { %v272_v13 = vpop.f32.mrf.mxu1 }
  0xcf   :  { %v273_v14 = vadd.f32 %v272_v13, %v253_v12  ;;  %v292_v15 = vpop.f32.mrf.mxu2 }
  0xd1   :  { %v293_v16 = vadd.f32 %v292_v15, %v273_v14 }
  0xd2   :  { %v312_v17 = vpop.f32.mrf.mxu3 }
  0xd3   :  { %v313_v18 = vadd.f32 %v312_v17, %v293_v16 }
  0xd5   :  { %v332_v19 = vpop.f32.mrf.mxu0 }
  0xd6   :  { %v333_v20 = vadd.f32 %v332_v19, %v313_v18 }
  0xd7   :  { %v352_v21 = vpop.f32.mrf.mxu1 }
  0xd8   :  { %v353_v22 = vadd.f32 %v352_v21, %v333_v20 }
  0xd9   :  { %v372_v23 = vpop.f32.mrf.mxu2 }
  0xda   :  { %v373_v24 = vadd.f32 %v372_v23, %v353_v22 }
  0xdb   :  { %v392_v25 = vpop.f32.mrf.mxu3 }
  0xdc   :  { %v393_v26 = vadd.f32 %v392_v25, %v373_v24 }
  0xde   :  { %v395_v27 = vmax.f32 %v393_v26, 0.0 }
  0xe0   :  { %558 = vmatmul.f32.vlgmr.msra.gmra.mxu0 %v395_v27  ;;  %578 = vmatmul.f32.vlgmr.msra.gmra.mxu1 %v395_v27 }
  0xe1   :  { %598 = vmatmul.f32.vlgmr.msra.gmra.mxu2 %v395_v27  ;;  %618 = vmatmul.f32.vlgmr.msra.gmra.mxu3 %v395_v27 }
  0xe8   :  { %638 = vmatmul.f32.vlgmr.msrb.gmra.mxu0 %v395_v27  ;;  %658 = vmatmul.f32.vlgmr.msrb.gmra.mxu1 %v395_v27 }
  0xe9   :  { %678 = vmatmul.f32.vlgmr.msrb.gmra.mxu2 %v395_v27  ;;  %698 = vmatmul.f32.vlgmr.msrb.gmra.mxu3 %v395_v27 }
 0x15d   :  { %v579_v30 = vpop.f32.mrf.mxu1  ;;  %v559_v32 = vpop.f32.mrf.mxu0 }
 0x15e   :  { %v580_v31 = vadd.f32 %v579_v30, %v527_v29  ;;  %v560_v42 = vadd.f32 %v559_v32, %v526_v35 }
 0x160   :  { %766 = vtanh.f32 %v580_v31 }
 0x164   :  { %v599_v36 = vpop.f32.mrf.mxu2  ;;  %v619_v37 = vpop.f32.mrf.mxu3 }
 0x165   :  { %v600_v39 = vadd.f32 %v599_v36, %v528_v33  ;;  %v620_v40 = vadd.f32 %v619_v37, %v529_v34  ;;  %v659_v41 = vpop.f32.mrf.mxu1  ;;  %v639_v48 = vpop.f32.mrf.mxu0 }
 0x166   :  { %v660_v43 = vadd.f32 %v659_v41, %v531_v38  ;;  %v767_v46 = vpop.eup %766  ;;  %v640_v57 = vadd.f32 %v639_v48, %v530_v47 }
 0x167   :  { %768 = vtanh.f32 %v600_v39  ;;  %v718_v52 = vrot.slane %v767_v46, 6 }
 0x168   :  { %770 = vtanh.f32 %v620_v40 }
 0x169   :  { %772 = vtanh.f32 %v560_v42 }
 0x16a   :  { %774 = vtanh.f32 %v660_v43 }
 0x16c   :  { %v679_v49 = vpop.f32.mrf.mxu2  ;;  %v699_v50 = vpop.f32.mrf.mxu3 }
 0x16d   :  { %v769_v51 = vpop.eup %768  ;;  %v680_v53 = vadd.f32 %v679_v49, %v532_v44  ;;  %v700_v54 = vadd.f32 %v699_v50, %v533_v45 }
 0x16e   :  { %v771_v55 = vpop.eup %770  ;;  %v719_v56 = vrot.slane %v769_v51, 4 }
 0x16f   :  { %v720_v58 = vrot.slane %v771_v55, 2  ;;  %776 = vtanh.f32 %v680_v53  ;;  %v773_v59 = vpop.eup %772 }
 0x170   :  { %778 = vtanh.f32 %v700_v54  ;;  %v725_v60 = vsel %vm724_vm0, %v773_v59, %v718_v52  ;;  %v775_v62 = vpop.eup %774 }
 0x171   :  { %v727_v61 = vsel %vm726_vm1, %v719_v56, %v720_v58  ;;  %780 = vtanh.f32 %v640_v57  ;;  %v721_v1 = vrot.slane %v775_v62, 6 }
 0x172   :  { %v729_v63 = vsel %vm728_vm2, %v725_v60, %v727_v61 }
 0x173   :  { %735 = vst [vmem:[#allocation10] sm:$0xff] %v729_v63 }
 0x175   :  { %v777_v0 = vpop.eup %776 }
 0x176   :  { %v779_v2 = vpop.eup %778  ;;  %v722_v3 = vrot.slane %v777_v0, 4 }
 0x177   :  { %v723_v4 = vrot.slane %v779_v2, 2  ;;  %v781_v5 = vpop.eup %780 }
 0x178   :  { %v730_v6 = vsel %vm724_vm0, %v781_v5, %v721_v1 }
 0x179   :  { %v731_v7 = vsel %vm726_vm1, %v722_v3, %v723_v4 }
 0x17a   :  { %v732_v8 = vsel %vm728_vm2, %v730_v6, %v731_v7 }
 0x17b   :  { %736 = vst [vmem:[#allocation10 + $0x8] sm:$0xff] %v732_v8 }
 0x17c   :  { %747 = dma.vmem_to_hbm [thread:$0]  %s743_s15, 256, %s745_s18, [#allocation4]  }
 0x17d   :  { %908 = dma.done.wait [#allocation4], 256  }
 0x17e   :  { %909 = vsyncadd [#allocation4], 4294967040 }
 0x17f   :  { %752 = vsyncpa [#allocation3], 1 }
 0x180   :  { %753 = vsyncpa [#allocation6], 1 }
 0x181   :  { %754 = vsyncpa [#allocation9], 1 }
 0x182   :  { %755 = vsyncpa [#allocation4], 1 }

</bundles_post_ra>
